<compile_context>
chip_gen: v7x
topology: tpu7x:2x2x1
jax: 0.10.0
libtpu: 0.0.40
codegen_flags: <defaults>
</compile_context>

<pallas_src>
import jax
import jax.numpy as jnp
import numpy as np
from jax.experimental import pallas as pl
from jax.experimental.pallas import tpu as pltpu

BN_EPS = 1e-5  # PyTorch BatchNorm1d default


def _lstm_bn_chunk_kernel(xw_ref, wh_ref, gamma_ref, beta_ref,
                          out_ref, hy_ref, cy_ref, h_ref, c_ref):
    """One time-chunk of the recurrence.

    xw_ref:    (Tc, B, 4H) precomputed x @ Wx for this chunk (time-major), f32
    wh_ref:    (H, 4H)     hidden-to-gates weight (constant block index -> loaded once)
    gamma_ref: (1, 4H)     BN gamma with the sigmoid 0.5 pre-scale folded in
    beta_ref:  (1, 4H)     BN beta  with the sigmoid 0.5 pre-scale folded in
    out_ref:   (Tc, B, H)  per-step hidden states for this chunk
    hy_ref:    (B, H)      final hidden state (resident block, refreshed every chunk)
    cy_ref:    (B, H)      final cell state
    h_ref:     (B, H)      carry scratch (persists across grid steps)
    c_ref:     (B, H)      carry scratch
    """
    Tc, B, H4 = xw_ref.shape
    H = wh_ref.shape[0]

    @pl.when(pl.program_id(0) == 0)
    def _init():
        h_ref[...] = jnp.zeros_like(h_ref)
        c_ref[...] = jnp.zeros_like(c_ref)

    # Constant weights / affine for the whole chunk.
    wh = wh_ref[...]
    gamma = gamma_ref[...]
    beta = beta_ref[...]

    # Post-correction for the single-tanh trick: sigmoid(x) = 0.5*(1 + tanh(x/2)).
    # The cell-gate chunk (columns [2H, 3H)) is a plain tanh -> scale 1, shift 0.
    col = jax.lax.broadcasted_iota(jnp.int32, (1, H4), 1)
    is_cell = (col >= 2 * H) & (col < 3 * H)
    post_scale = jnp.where(is_cell, 1.0, 0.5).astype(jnp.float32)
    post_shift = jnp.where(is_cell, 0.0, 0.5).astype(jnp.float32)

    inv_b = jnp.float32(1.0 / B)

    def step(t, carry):
        h, c = carry

        # Gate pre-activation: hoisted xW for this step + recurrent projection (f32 MXU).
        gates = xw_ref[t] + jnp.dot(h, wh, preferred_element_type=jnp.float32)

        # Training-mode BatchNorm over the batch axis (biased variance), per feature.
        # One-pass statistics: two independent cross-sublane reductions.
        mean = jnp.sum(gates, axis=0, keepdims=True) * inv_b
        ex2 = jnp.sum(gates * gates, axis=0, keepdims=True) * inv_b
        var = jnp.maximum(ex2 - mean * mean, 0.0)
        scale = gamma * jax.lax.rsqrt(var + BN_EPS)   # gamma carries the 0.5 pre-scale
        shift = beta - mean * scale

        # One full-width tanh on the (B, 4H) block, then per-chunk affine correction.
        act = jnp.tanh(gates * scale + shift) * post_scale + post_shift

        i_g = act[:, 0 * H:1 * H]   # sigmoid(ingate)
        f_g = act[:, 1 * H:2 * H]   # sigmoid(forgetgate)
        g_g = act[:, 2 * H:3 * H]   # tanh(cellgate)
        o_g = act[:, 3 * H:4 * H]   # sigmoid(outgate)

        c_new = f_g * c + i_g * g_g
        h_new = o_g * jnp.tanh(c_new)

        out_ref[t] = h_new.astype(out_ref.dtype)
        return (h_new, c_new)

    # Bounded unroll keeps scheduler visibility without exploding program size at
    # production chunk lengths (full unroll only when the chunk itself is tiny).
    unroll = min(int(Tc), 8)
    h_fin, c_fin = jax.lax.fori_loop(0, Tc, step, (h_ref[...], c_ref[...]),
                                     unroll=unroll)

    # Persist the carry for the next chunk; refresh the (tiny) final-state outputs.
    h_ref[...] = h_fin
    c_ref[...] = c_fin
    hy_ref[...] = h_fin.astype(hy_ref.dtype)
    cy_ref[...] = c_fin.astype(cy_ref.dtype)


def lstm_with_bn_pallas(x_btI, wx, wh, b, gamma, beta, *,
                        time_chunk=None, chunk_vmem_budget_bytes=24 << 20):
    """x_btI: (B, T, I) like PyTorch.  Returns (outputs (B, T, H), (hy, cy)).

    `b` (the Linear bias) is accepted for API compatibility but unused: training-mode
    BN subtracts the per-feature batch mean, which cancels any per-feature constant.
    """
    del b  # mathematically cancelled by BN mean subtraction (training-mode BN only)
    B, T, I = x_btI.shape
    H4 = wx.shape[1]
    H = H4 // 4
    elem = 4  # f32 bytes

    hi = jax.lax.Precision.HIGHEST

    # Hoisted input projection.  Transpose the SMALL (B,T,I) input to time-major first
    # so the big (T,B,4H) result is produced directly in the kernel layout (no HBM
    # layout pass over the 4H-wide projection).
    x_tbI = jnp.transpose(x_btI, (1, 0, 2)).astype(jnp.float32)
    xw_tb = jnp.einsum('tbi,if->tbf', x_tbI, wx.astype(jnp.float32),
                       precision=hi)                      # (T, B, 4H)

    # Fold the sigmoid half-scale (i/f/o chunks) into the BN affine so the kernel can
    # apply a single full-width tanh.
    pre = jnp.concatenate(
        [jnp.full((1, H), 0.5, jnp.float32),
         jnp.full((1, H), 0.5, jnp.float32),
         jnp.ones((1, H), jnp.float32),
         jnp.full((1, H), 0.5, jnp.float32)], axis=1)
    gamma_k = (gamma.reshape(1, H4) * pre).astype(jnp.float32)
    beta_k = (beta.reshape(1, H4) * pre).astype(jnp.float32)

    # --- time-chunk selection: largest divisor of T whose double-buffered xw+out
    # --- chunks fit the per-generation budget (conservative for v7x's 64 MiB VMEM).
    def chunk_bytes(tc):
        return 2 * (tc * B * H4 + tc * B * H) * elem      # xw + out, double-buffered

    if time_chunk is not None:
        assert T % time_chunk == 0, "time_chunk must divide T"
        Tc = int(time_chunk)
    else:
        Tc = 1
        for cand in range(T, 0, -1):
            if T % cand == 0 and chunk_bytes(cand) <= chunk_vmem_budget_bytes:
                Tc = cand
                break
    n_chunks = T // Tc

    # Scoped-VMEM limit sized from the actual resident buffers (+ headroom), floored at
    # the 32 MiB default and capped at 48 MiB so it always fits v7x physical VMEM.
    resident = (chunk_bytes(Tc)
                + 2 * (H * H4 + 2 * H4) * elem            # wh / gamma / beta blocks
                + (2 * 2 + 2) * (B * H) * elem)           # hy, cy blocks + h/c scratch
    vmem_limit = int(min(max(resident + (8 << 20), 32 << 20), 48 << 20))

    grid_spec = pltpu.PrefetchScalarGridSpec(
        num_scalar_prefetch=0,
        grid=(n_chunks,),
        in_specs=[
            pl.BlockSpec((Tc, B, H4), lambda t: (t, 0, 0)),   # streamed xW chunks
            pl.BlockSpec((H, H4), lambda t: (0, 0)),          # constant -> loaded once
            pl.BlockSpec((1, H4), lambda t: (0, 0)),
            pl.BlockSpec((1, H4), lambda t: (0, 0)),
        ],
        out_specs=[
            pl.BlockSpec((Tc, B, H), lambda t: (t, 0, 0)),    # streamed output chunks
            pl.BlockSpec((B, H), lambda t: (0, 0)),           # hy (resident)
            pl.BlockSpec((B, H), lambda t: (0, 0)),           # cy (resident)
        ],
        scratch_shapes=[pltpu.VMEM((B, H), jnp.float32),      # h carry
                        pltpu.VMEM((B, H), jnp.float32)],     # c carry
    )

    out_tbH, hy, cy = pl.pallas_call(
        _lstm_bn_chunk_kernel,
        out_shape=(
            jax.ShapeDtypeStruct((T, B, H), jnp.float32),
            jax.ShapeDtypeStruct((B, H), jnp.float32),
            jax.ShapeDtypeStruct((B, H), jnp.float32),
        ),
        grid_spec=grid_spec,
        compiler_params=pltpu.CompilerParams(
            dimension_semantics=("arbitrary",),
            vmem_limit_bytes=vmem_limit),
    )(xw_tb, wh.astype(jnp.float32), gamma_k, beta_k)

    # Remaining small layout fix back to the PyTorch (B, T, H) convention.
    outputs = jnp.transpose(out_tbH, (1, 0, 2))
    return outputs, (hy, cy)


def _reference_jax(x_btI, wx, wh, b, gamma, beta):
    """Pure-JAX reference mirroring the PyTorch forward (training-mode BN, with bias)."""
    B, T, I = x_btI.shape
    H = wh.shape[0]
    hi = jax.lax.Precision.HIGHEST
    h = jnp.zeros((B, H), jnp.float32)
    c = jnp.zeros((B, H), jnp.float32)
    outs = []
    for t in range(T):
        gates = (jnp.dot(x_btI[:, t, :], wx, precision=hi)
                 + jnp.dot(h, wh, precision=hi) + b)
        mean = jnp.mean(gates, axis=0, keepdims=True)
        var = jnp.mean(jnp.square(gates - mean), axis=0, keepdims=True)
        gbn = (gates - mean) / jnp.sqrt(var + BN_EPS) * gamma + beta
        i_g = jax.nn.sigmoid(gbn[:, 0 * H:1 * H])
        f_g = jax.nn.sigmoid(gbn[:, 1 * H:2 * H])
        g_g = jnp.tanh(gbn[:, 2 * H:3 * H])
        o_g = jax.nn.sigmoid(gbn[:, 3 * H:4 * H])
        c = f_g * c + i_g * g_g
        h = o_g * jnp.tanh(c)
        outs.append(h)
    return jnp.stack(outs, axis=1), (h, c)


if __name__ == "__main__":
    # Small, deterministic setup: batch=4, seq=8, input_size=16, hidden=32.
    B, T, I, H = 4, 8, 16, 32
    key = jax.random.PRNGKey(0)
    k_x, k_w, k_b, k_g, k_bt = jax.random.split(key, 5)

    x = jax.random.normal(k_x, (B, T, I), dtype=jnp.float32)

    # nn.Linear(input_size + hidden_size, 4 * hidden_size): weight (4H, I+H), bias (4H,)
    fan_in = I + H
    bound = 1.0 / np.sqrt(fan_in)
    w_full = jax.random.uniform(k_w, (I + H, 4 * H), jnp.float32, -bound, bound)
    wx = w_full[:I, :]            # (I, 4H)
    wh = w_full[I:, :]            # (H, 4H)
    b = jax.random.uniform(k_b, (1, 4 * H), jnp.float32, -bound, bound)

    # Four BatchNorm1d(hidden_size) affine params, concatenated gate-wise -> (1, 4H)
    gamma = 1.0 + 0.1 * jax.random.normal(k_g, (1, 4 * H), dtype=jnp.float32)
    beta = 0.1 * jax.random.normal(k_bt, (1, 4 * H), dtype=jnp.float32)

    ref_out, (ref_h, ref_c) = _reference_jax(x, wx, wh, b, gamma, beta)

    # 1) Default chunking (whole sequence fits -> single grid step).
    outputs, (hy, cy) = lstm_with_bn_pallas(x, wx, wh, b, gamma, beta)
    jax.block_until_ready((outputs, hy, cy))
    assert outputs.shape == (B, T, H)
    assert hy.shape == (B, H) and cy.shape == (B, H)
    np.testing.assert_allclose(np.asarray(outputs), np.asarray(ref_out), rtol=1e-4, atol=1e-4)
    np.testing.assert_allclose(np.asarray(hy), np.asarray(ref_h), rtol=1e-4, atol=1e-4)
    np.testing.assert_allclose(np.asarray(cy), np.asarray(ref_c), rtol=1e-4, atol=1e-4)

    # 2) Forced multi-chunk path (Tc=2 -> 4 grid steps) to exercise the carry logic.
    outputs2, (hy2, cy2) = lstm_with_bn_pallas(x, wx, wh, b, gamma, beta, time_chunk=2)
    jax.block_until_ready((outputs2, hy2, cy2))
    np.testing.assert_allclose(np.asarray(outputs2), np.asarray(ref_out), rtol=1e-4, atol=1e-4)
    np.testing.assert_allclose(np.asarray(hy2), np.asarray(ref_h), rtol=1e-4, atol=1e-4)
    np.testing.assert_allclose(np.asarray(cy2), np.asarray(ref_c), rtol=1e-4, atol=1e-4)

    print("KERNEL_OK")
</pallas_src>

<mosaic_0001>
module attributes {stable_mosaic.version = 11 : i64} {
  func.func @_lstm_bn_chunk_kernel(%arg0: i32, %arg1: memref<8x4x128xf32, #tpu.memory_space<vmem>>, %arg2: memref<32x128xf32, #tpu.memory_space<vmem>>, %arg3: memref<1x128xf32, #tpu.memory_space<vmem>>, %arg4: memref<1x128xf32, #tpu.memory_space<vmem>>, %arg5: memref<8x4x32xf32, #tpu.memory_space<vmem>>, %arg6: memref<4x32xf32, #tpu.memory_space<vmem>>, %arg7: memref<4x32xf32, #tpu.memory_space<vmem>>, %arg8: memref<4x32xf32, #tpu.memory_space<vmem>>, %arg9: memref<4x32xf32, #tpu.memory_space<vmem>>) attributes {dimension_semantics = [#tpu.dimension_semantics<arbitrary>], iteration_bounds = array<i64: 1>, scalar_prefetch = 0 : i64, scratch_operands = 2 : i64, tpu.core_type = #tpu.core_type<tc>, window_params = [{transform_indices = @transform_0, window_bounds = array<i64: 8, 4, 128>}, {pipeline_mode = #tpu.pipeline_mode<synchronous>, transform_indices = @transform_1, window_bounds = array<i64: 32, 128>}, {pipeline_mode = #tpu.pipeline_mode<synchronous>, transform_indices = @transform_2, window_bounds = array<i64: 1, 128>}, {pipeline_mode = #tpu.pipeline_mode<synchronous>, transform_indices = @transform_3, window_bounds = array<i64: 1, 128>}, {transform_indices = @transform_4, window_bounds = array<i64: 8, 4, 32>}, {pipeline_mode = #tpu.pipeline_mode<synchronous>, transform_indices = @transform_5, window_bounds = array<i64: 4, 32>}, {pipeline_mode = #tpu.pipeline_mode<synchronous>, transform_indices = @transform_6, window_bounds = array<i64: 4, 32>}]} {
    %c0_i32 = arith.constant 0 : i32
    %0 = arith.cmpi eq, %arg0, %c0_i32 : i32
    %1 = arith.extui %0 : i1 to i32
    %c0_i32_0 = arith.constant 0 : i32
    %2 = arith.cmpi ne, %1, %c0_i32_0 : i32
    scf.if %2 {
      %cst_95 = arith.constant 0.000000e+00 : f32
      %392 = vector.broadcast %cst_95 : f32 to vector<4x32xf32>
      %c0_96 = arith.constant 0 : index
      %c0_97 = arith.constant 0 : index
      %393 = vector.load %arg8[%c0_96, %c0_97] : memref<4x32xf32, #tpu.memory_space<vmem>>, vector<4x32xf32>
      tpu.vector_store %arg8[%c0_96, %c0_97], %392 {strides = array<i32>} : memref<4x32xf32, #tpu.memory_space<vmem>>, vector<4x32xf32>,
      %cst_98 = arith.constant 0.000000e+00 : f32
      %394 = vector.broadcast %cst_98 : f32 to vector<4x32xf32>
      %c0_99 = arith.constant 0 : index
      %c0_100 = arith.constant 0 : index
      %395 = vector.load %arg9[%c0_99, %c0_100] : memref<4x32xf32, #tpu.memory_space<vmem>>, vector<4x32xf32>
      tpu.vector_store %arg9[%c0_99, %c0_100], %394 {strides = array<i32>} : memref<4x32xf32, #tpu.memory_space<vmem>>, vector<4x32xf32>,
    } else {
    }
    %c0 = arith.constant 0 : index
    %c0_1 = arith.constant 0 : index
    %3 = vector.load %arg2[%c0, %c0_1] : memref<32x128xf32, #tpu.memory_space<vmem>>, vector<32x128xf32>
    %c0_2 = arith.constant 0 : index
    %c0_3 = arith.constant 0 : index
    %4 = vector.load %arg3[%c0_2, %c0_3] : memref<1x128xf32, #tpu.memory_space<vmem>>, vector<1x128xf32>
    %c0_4 = arith.constant 0 : index
    %c0_5 = arith.constant 0 : index
    %5 = vector.load %arg4[%c0_4, %c0_5] : memref<1x128xf32, #tpu.memory_space<vmem>>, vector<1x128xf32>
    %6 = tpu.iota {dimensions = array<i32: 1>} : vector<1x128xi32>
    %c64_i32 = arith.constant 64 : i32
    %7 = vector.broadcast %c64_i32 : i32 to vector<1x128xi32>
    %8 = arith.cmpi sge, %6, %7 : vector<1x128xi32>
    %c96_i32 = arith.constant 96 : i32
    %9 = vector.broadcast %c96_i32 : i32 to vector<1x128xi32>
    %10 = arith.cmpi slt, %6, %9 : vector<1x128xi32>
    %11 = arith.andi %8, %10 : vector<1x128xi1>
    %cst = arith.constant 1.000000e+00 : f32
    %cst_6 = arith.constant 5.000000e-01 : f32
    %12 = vector.broadcast %cst : f32 to vector<1x128xf32>
    %13 = vector.broadcast %cst_6 : f32 to vector<1x128xf32>
    %14 = arith.select %11, %12, %13 : vector<1x128xi1>, vector<1x128xf32>
    %cst_7 = arith.constant 0.000000e+00 : f32
    %cst_8 = arith.constant 5.000000e-01 : f32
    %15 = vector.broadcast %cst_7 : f32 to vector<1x128xf32>
    %16 = vector.broadcast %cst_8 : f32 to vector<1x128xf32>
    %17 = arith.select %11, %15, %16 : vector<1x128xi1>, vector<1x128xf32>
    %c0_9 = arith.constant 0 : index
    %c0_10 = arith.constant 0 : index
    %18 = vector.load %arg8[%c0_9, %c0_10] : memref<4x32xf32, #tpu.memory_space<vmem>>, vector<4x32xf32>
    %c0_11 = arith.constant 0 : index
    %c0_12 = arith.constant 0 : index
    %19 = vector.load %arg9[%c0_11, %c0_12] : memref<4x32xf32, #tpu.memory_space<vmem>>, vector<4x32xf32>
    %cst_13 = arith.constant 2.500000e-01 : f32
    %c0_i32_14 = arith.constant 0 : i32
    %20 = arith.index_cast %c0_i32_14 : i32 to index
    %c0_15 = arith.constant 0 : index
    %c0_16 = arith.constant 0 : index
    %21 = vector.load %arg1[%20, %c0_15, %c0_16] : memref<8x4x128xf32, #tpu.memory_space<vmem>>, vector<1x4x128xf32>
    %22 = vector.shape_cast %21 : vector<1x4x128xf32> to vector<4x128xf32>
    %cst_17 = arith.constant dense<0.000000e+00> : vector<4x128xf32>
    %23 = tpu.matmul %18, %3, %cst_17 {dimension_numbers = #tpu.dot_dimension_numbers<[1], [0], [0], [1], [0, 0, 1, 1], [], []>} : vector<4x32xf32>, vector<32x128xf32>, vector<4x128xf32> -> vector<4x128xf32>
    %24 = arith.addf %22, %23 : vector<4x128xf32>
    %cst_18 = arith.constant dense<0.000000e+00> : vector<128xf32>
    %25 = vector.multi_reduction <add>, %24, %cst_18 [0] : vector<4x128xf32> to vector<128xf32>
    %26 = vector.shape_cast %25 : vector<128xf32> to vector<1x128xf32>
    %27 = vector.broadcast %cst_13 : f32 to vector<1x128xf32>
    %28 = arith.mulf %26, %27 : vector<1x128xf32>
    %29 = arith.mulf %24, %24 : vector<4x128xf32>
    %cst_19 = arith.constant dense<0.000000e+00> : vector<128xf32>
    %30 = vector.multi_reduction <add>, %29, %cst_19 [0] : vector<4x128xf32> to vector<128xf32>
    %31 = vector.shape_cast %30 : vector<128xf32> to vector<1x128xf32>
    %32 = vector.broadcast %cst_13 : f32 to vector<1x128xf32>
    %33 = arith.mulf %31, %32 : vector<1x128xf32>
    %34 = arith.mulf %28, %28 : vector<1x128xf32>
    %35 = arith.subf %33, %34 : vector<1x128xf32>
    %cst_20 = arith.constant 0.000000e+00 : f32
    %36 = vector.broadcast %cst_20 : f32 to vector<1x128xf32>
    %37 = arith.maximumf %35, %36 : vector<1x128xf32>
    %cst_21 = arith.constant 9.99999974E-6 : f32
    %38 = vector.broadcast %cst_21 : f32 to vector<1x128xf32>
    %39 = arith.addf %37, %38 : vector<1x128xf32>
    %40 = math.rsqrt %39 : vector<1x128xf32>
    %41 = arith.mulf %4, %40 : vector<1x128xf32>
    %42 = arith.mulf %28, %41 : vector<1x128xf32>
    %43 = arith.subf %5, %42 : vector<1x128xf32>
    %44 = vector.broadcast %41 : vector<1x128xf32> to vector<4x128xf32>
    %45 = arith.mulf %24, %44 : vector<4x128xf32>
    %46 = vector.broadcast %43 : vector<1x128xf32> to vector<4x128xf32>
    %47 = arith.addf %45, %46 : vector<4x128xf32>
    %48 = math.tanh %47 : vector<4x128xf32>
    %49 = vector.broadcast %14 : vector<1x128xf32> to vector<4x128xf32>
    %50 = arith.mulf %48, %49 : vector<4x128xf32>
    %51 = vector.broadcast %17 : vector<1x128xf32> to vector<4x128xf32>
    %52 = arith.addf %50, %51 : vector<4x128xf32>
    %53 = vector.extract_strided_slice %52 {offsets = [0, 0], sizes = [4, 32], strides = [1, 1]} : vector<4x128xf32> to vector<4x32xf32>
    %54 = vector.extract_strided_slice %52 {offsets = [0, 32], sizes = [4, 32], strides = [1, 1]} : vector<4x128xf32> to vector<4x32xf32>
    %55 = vector.extract_strided_slice %52 {offsets = [0, 64], sizes = [4, 32], strides = [1, 1]} : vector<4x128xf32> to vector<4x32xf32>
    %56 = vector.extract_strided_slice %52 {offsets = [0, 96], sizes = [4, 32], strides = [1, 1]} : vector<4x128xf32> to vector<4x32xf32>
    %57 = arith.mulf %54, %19 : vector<4x32xf32>
    %58 = arith.mulf %53, %55 : vector<4x32xf32>
    %59 = arith.addf %57, %58 : vector<4x32xf32>
    %60 = math.tanh %59 : vector<4x32xf32>
    %61 = arith.mulf %56, %60 : vector<4x32xf32>
    %62 = arith.index_cast %c0_i32_14 : i32 to index
    %c0_22 = arith.constant 0 : index
    %c0_23 = arith.constant 0 : index
    %63 = vector.load %arg5[%62, %c0_22, %c0_23] : memref<8x4x32xf32, #tpu.memory_space<vmem>>, vector<1x4x32xf32>
    %64 = vector.shape_cast %63 : vector<1x4x32xf32> to vector<4x32xf32>
    %65 = vector.shape_cast %61 : vector<4x32xf32> to vector<1x4x32xf32>
    tpu.vector_store %arg5[%62, %c0_22, %c0_23], %65 {strides = array<i32>} : memref<8x4x32xf32, #tpu.memory_space<vmem>>, vector<1x4x32xf32>,
    %c1_i32 = arith.constant 1 : i32
    %66 = arith.index_cast %c1_i32 : i32 to index
    %c0_24 = arith.constant 0 : index
    %c0_25 = arith.constant 0 : index
    %67 = vector.load %arg1[%66, %c0_24, %c0_25] : memref<8x4x128xf32, #tpu.memory_space<vmem>>, vector<1x4x128xf32>
    %68 = vector.shape_cast %67 : vector<1x4x128xf32> to vector<4x128xf32>
    %cst_26 = arith.constant dense<0.000000e+00> : vector<4x128xf32>
    %69 = tpu.matmul %61, %3, %cst_26 {dimension_numbers = #tpu.dot_dimension_numbers<[1], [0], [0], [1], [0, 0, 1, 1], [], []>} : vector<4x32xf32>, vector<32x128xf32>, vector<4x128xf32> -> vector<4x128xf32>
    %70 = arith.addf %68, %69 : vector<4x128xf32>
    %cst_27 = arith.constant dense<0.000000e+00> : vector<128xf32>
    %71 = vector.multi_reduction <add>, %70, %cst_27 [0] : vector<4x128xf32> to vector<128xf32>
    %72 = vector.shape_cast %71 : vector<128xf32> to vector<1x128xf32>
    %73 = vector.broadcast %cst_13 : f32 to vector<1x128xf32>
    %74 = arith.mulf %72, %73 : vector<1x128xf32>
    %75 = arith.mulf %70, %70 : vector<4x128xf32>
    %cst_28 = arith.constant dense<0.000000e+00> : vector<128xf32>
    %76 = vector.multi_reduction <add>, %75, %cst_28 [0] : vector<4x128xf32> to vector<128xf32>
    %77 = vector.shape_cast %76 : vector<128xf32> to vector<1x128xf32>
    %78 = vector.broadcast %cst_13 : f32 to vector<1x128xf32>
    %79 = arith.mulf %77, %78 : vector<1x128xf32>
    %80 = arith.mulf %74, %74 : vector<1x128xf32>
    %81 = arith.subf %79, %80 : vector<1x128xf32>
    %cst_29 = arith.constant 0.000000e+00 : f32
    %82 = vector.broadcast %cst_29 : f32 to vector<1x128xf32>
    %83 = arith.maximumf %81, %82 : vector<1x128xf32>
    %cst_30 = arith.constant 9.99999974E-6 : f32
    %84 = vector.broadcast %cst_30 : f32 to vector<1x128xf32>
    %85 = arith.addf %83, %84 : vector<1x128xf32>
    %86 = math.rsqrt %85 : vector<1x128xf32>
    %87 = arith.mulf %4, %86 : vector<1x128xf32>
    %88 = arith.mulf %74, %87 : vector<1x128xf32>
    %89 = arith.subf %5, %88 : vector<1x128xf32>
    %90 = vector.broadcast %87 : vector<1x128xf32> to vector<4x128xf32>
    %91 = arith.mulf %70, %90 : vector<4x128xf32>
    %92 = vector.broadcast %89 : vector<1x128xf32> to vector<4x128xf32>
    %93 = arith.addf %91, %92 : vector<4x128xf32>
    %94 = math.tanh %93 : vector<4x128xf32>
    %95 = vector.broadcast %14 : vector<1x128xf32> to vector<4x128xf32>
    %96 = arith.mulf %94, %95 : vector<4x128xf32>
    %97 = vector.broadcast %17 : vector<1x128xf32> to vector<4x128xf32>
    %98 = arith.addf %96, %97 : vector<4x128xf32>
    %99 = vector.extract_strided_slice %98 {offsets = [0, 0], sizes = [4, 32], strides = [1, 1]} : vector<4x128xf32> to vector<4x32xf32>
    %100 = vector.extract_strided_slice %98 {offsets = [0, 32], sizes = [4, 32], strides = [1, 1]} : vector<4x128xf32> to vector<4x32xf32>
    %101 = vector.extract_strided_slice %98 {offsets = [0, 64], sizes = [4, 32], strides = [1, 1]} : vector<4x128xf32> to vector<4x32xf32>
    %102 = vector.extract_strided_slice %98 {offsets = [0, 96], sizes = [4, 32], strides = [1, 1]} : vector<4x128xf32> to vector<4x32xf32>
    %103 = arith.mulf %100, %59 : vector<4x32xf32>
    %104 = arith.mulf %99, %101 : vector<4x32xf32>
    %105 = arith.addf %103, %104 : vector<4x32xf32>
    %106 = math.tanh %105 : vector<4x32xf32>
    %107 = arith.mulf %102, %106 : vector<4x32xf32>
    %108 = arith.index_cast %c1_i32 : i32 to index
    %c0_31 = arith.constant 0 : index
    %c0_32 = arith.constant 0 : index
    %109 = vector.load %arg5[%108, %c0_31, %c0_32] : memref<8x4x32xf32, #tpu.memory_space<vmem>>, vector<1x4x32xf32>
    %110 = vector.shape_cast %109 : vector<1x4x32xf32> to vector<4x32xf32>
    %111 = vector.shape_cast %107 : vector<4x32xf32> to vector<1x4x32xf32>
    tpu.vector_store %arg5[%108, %c0_31, %c0_32], %111 {strides = array<i32>} : memref<8x4x32xf32, #tpu.memory_space<vmem>>, vector<1x4x32xf32>,
    %c2_i32 = arith.constant 2 : i32
    %112 = arith.index_cast %c2_i32 : i32 to index
    %c0_33 = arith.constant 0 : index
    %c0_34 = arith.constant 0 : index
    %113 = vector.load %arg1[%112, %c0_33, %c0_34] : memref<8x4x128xf32, #tpu.memory_space<vmem>>, vector<1x4x128xf32>
    %114 = vector.shape_cast %113 : vector<1x4x128xf32> to vector<4x128xf32>
    %cst_35 = arith.constant dense<0.000000e+00> : vector<4x128xf32>
    %115 = tpu.matmul %107, %3, %cst_35 {dimension_numbers = #tpu.dot_dimension_numbers<[1], [0], [0], [1], [0, 0, 1, 1], [], []>} : vector<4x32xf32>, vector<32x128xf32>, vector<4x128xf32> -> vector<4x128xf32>
    %116 = arith.addf %114, %115 : vector<4x128xf32>
    %cst_36 = arith.constant dense<0.000000e+00> : vector<128xf32>
    %117 = vector.multi_reduction <add>, %116, %cst_36 [0] : vector<4x128xf32> to vector<128xf32>
    %118 = vector.shape_cast %117 : vector<128xf32> to vector<1x128xf32>
    %119 = vector.broadcast %cst_13 : f32 to vector<1x128xf32>
    %120 = arith.mulf %118, %119 : vector<1x128xf32>
    %121 = arith.mulf %116, %116 : vector<4x128xf32>
    %cst_37 = arith.constant dense<0.000000e+00> : vector<128xf32>
    %122 = vector.multi_reduction <add>, %121, %cst_37 [0] : vector<4x128xf32> to vector<128xf32>
    %123 = vector.shape_cast %122 : vector<128xf32> to vector<1x128xf32>
    %124 = vector.broadcast %cst_13 : f32 to vector<1x128xf32>
    %125 = arith.mulf %123, %124 : vector<1x128xf32>
    %126 = arith.mulf %120, %120 : vector<1x128xf32>
    %127 = arith.subf %125, %126 : vector<1x128xf32>
    %cst_38 = arith.constant 0.000000e+00 : f32
    %128 = vector.broadcast %cst_38 : f32 to vector<1x128xf32>
    %129 = arith.maximumf %127, %128 : vector<1x128xf32>
    %cst_39 = arith.constant 9.99999974E-6 : f32
    %130 = vector.broadcast %cst_39 : f32 to vector<1x128xf32>
    %131 = arith.addf %129, %130 : vector<1x128xf32>
    %132 = math.rsqrt %131 : vector<1x128xf32>
    %133 = arith.mulf %4, %132 : vector<1x128xf32>
    %134 = arith.mulf %120, %133 : vector<1x128xf32>
    %135 = arith.subf %5, %134 : vector<1x128xf32>
    %136 = vector.broadcast %133 : vector<1x128xf32> to vector<4x128xf32>
    %137 = arith.mulf %116, %136 : vector<4x128xf32>
    %138 = vector.broadcast %135 : vector<1x128xf32> to vector<4x128xf32>
    %139 = arith.addf %137, %138 : vector<4x128xf32>
    %140 = math.tanh %139 : vector<4x128xf32>
    %141 = vector.broadcast %14 : vector<1x128xf32> to vector<4x128xf32>
    %142 = arith.mulf %140, %141 : vector<4x128xf32>
    %143 = vector.broadcast %17 : vector<1x128xf32> to vector<4x128xf32>
    %144 = arith.addf %142, %143 : vector<4x128xf32>
    %145 = vector.extract_strided_slice %144 {offsets = [0, 0], sizes = [4, 32], strides = [1, 1]} : vector<4x128xf32> to vector<4x32xf32>
    %146 = vector.extract_strided_slice %144 {offsets = [0, 32], sizes = [4, 32], strides = [1, 1]} : vector<4x128xf32> to vector<4x32xf32>
    %147 = vector.extract_strided_slice %144 {offsets = [0, 64], sizes = [4, 32], strides = [1, 1]} : vector<4x128xf32> to vector<4x32xf32>
    %148 = vector.extract_strided_slice %144 {offsets = [0, 96], sizes = [4, 32], strides = [1, 1]} : vector<4x128xf32> to vector<4x32xf32>
    %149 = arith.mulf %146, %105 : vector<4x32xf32>
    %150 = arith.mulf %145, %147 : vector<4x32xf32>
    %151 = arith.addf %149, %150 : vector<4x32xf32>
    %152 = math.tanh %151 : vector<4x32xf32>
    %153 = arith.mulf %148, %152 : vector<4x32xf32>
    %154 = arith.index_cast %c2_i32 : i32 to index
    %c0_40 = arith.constant 0 : index
    %c0_41 = arith.constant 0 : index
    %155 = vector.load %arg5[%154, %c0_40, %c0_41] : memref<8x4x32xf32, #tpu.memory_space<vmem>>, vector<1x4x32xf32>
    %156 = vector.shape_cast %155 : vector<1x4x32xf32> to vector<4x32xf32>
    %157 = vector.shape_cast %153 : vector<4x32xf32> to vector<1x4x32xf32>
    tpu.vector_store %arg5[%154, %c0_40, %c0_41], %157 {strides = array<i32>} : memref<8x4x32xf32, #tpu.memory_space<vmem>>, vector<1x4x32xf32>,
    %c3_i32 = arith.constant 3 : i32
    %158 = arith.index_cast %c3_i32 : i32 to index
    %c0_42 = arith.constant 0 : index
    %c0_43 = arith.constant 0 : index
    %159 = vector.load %arg1[%158, %c0_42, %c0_43] : memref<8x4x128xf32, #tpu.memory_space<vmem>>, vector<1x4x128xf32>
    %160 = vector.shape_cast %159 : vector<1x4x128xf32> to vector<4x128xf32>
    %cst_44 = arith.constant dense<0.000000e+00> : vector<4x128xf32>
    %161 = tpu.matmul %153, %3, %cst_44 {dimension_numbers = #tpu.dot_dimension_numbers<[1], [0], [0], [1], [0, 0, 1, 1], [], []>} : vector<4x32xf32>, vector<32x128xf32>, vector<4x128xf32> -> vector<4x128xf32>
    %162 = arith.addf %160, %161 : vector<4x128xf32>
    %cst_45 = arith.constant dense<0.000000e+00> : vector<128xf32>
    %163 = vector.multi_reduction <add>, %162, %cst_45 [0] : vector<4x128xf32> to vector<128xf32>
    %164 = vector.shape_cast %163 : vector<128xf32> to vector<1x128xf32>
    %165 = vector.broadcast %cst_13 : f32 to vector<1x128xf32>
    %166 = arith.mulf %164, %165 : vector<1x128xf32>
    %167 = arith.mulf %162, %162 : vector<4x128xf32>
    %cst_46 = arith.constant dense<0.000000e+00> : vector<128xf32>
    %168 = vector.multi_reduction <add>, %167, %cst_46 [0] : vector<4x128xf32> to vector<128xf32>
    %169 = vector.shape_cast %168 : vector<128xf32> to vector<1x128xf32>
    %170 = vector.broadcast %cst_13 : f32 to vector<1x128xf32>
    %171 = arith.mulf %169, %170 : vector<1x128xf32>
    %172 = arith.mulf %166, %166 : vector<1x128xf32>
    %173 = arith.subf %171, %172 : vector<1x128xf32>
    %cst_47 = arith.constant 0.000000e+00 : f32
    %174 = vector.broadcast %cst_47 : f32 to vector<1x128xf32>
    %175 = arith.maximumf %173, %174 : vector<1x128xf32>
    %cst_48 = arith.constant 9.99999974E-6 : f32
    %176 = vector.broadcast %cst_48 : f32 to vector<1x128xf32>
    %177 = arith.addf %175, %176 : vector<1x128xf32>
    %178 = math.rsqrt %177 : vector<1x128xf32>
    %179 = arith.mulf %4, %178 : vector<1x128xf32>
    %180 = arith.mulf %166, %179 : vector<1x128xf32>
    %181 = arith.subf %5, %180 : vector<1x128xf32>
    %182 = vector.broadcast %179 : vector<1x128xf32> to vector<4x128xf32>
    %183 = arith.mulf %162, %182 : vector<4x128xf32>
    %184 = vector.broadcast %181 : vector<1x128xf32> to vector<4x128xf32>
    %185 = arith.addf %183, %184 : vector<4x128xf32>
    %186 = math.tanh %185 : vector<4x128xf32>
    %187 = vector.broadcast %14 : vector<1x128xf32> to vector<4x128xf32>
    %188 = arith.mulf %186, %187 : vector<4x128xf32>
    %189 = vector.broadcast %17 : vector<1x128xf32> to vector<4x128xf32>
    %190 = arith.addf %188, %189 : vector<4x128xf32>
    %191 = vector.extract_strided_slice %190 {offsets = [0, 0], sizes = [4, 32], strides = [1, 1]} : vector<4x128xf32> to vector<4x32xf32>
    %192 = vector.extract_strided_slice %190 {offsets = [0, 32], sizes = [4, 32], strides = [1, 1]} : vector<4x128xf32> to vector<4x32xf32>
    %193 = vector.extract_strided_slice %190 {offsets = [0, 64], sizes = [4, 32], strides = [1, 1]} : vector<4x128xf32> to vector<4x32xf32>
    %194 = vector.extract_strided_slice %190 {offsets = [0, 96], sizes = [4, 32], strides = [1, 1]} : vector<4x128xf32> to vector<4x32xf32>
    %195 = arith.mulf %192, %151 : vector<4x32xf32>
    %196 = arith.mulf %191, %193 : vector<4x32xf32>
    %197 = arith.addf %195, %196 : vector<4x32xf32>
    %198 = math.tanh %197 : vector<4x32xf32>
    %199 = arith.mulf %194, %198 : vector<4x32xf32>
    %200 = arith.index_cast %c3_i32 : i32 to index
    %c0_49 = arith.constant 0 : index
    %c0_50 = arith.constant 0 : index
    %201 = vector.load %arg5[%200, %c0_49, %c0_50] : memref<8x4x32xf32, #tpu.memory_space<vmem>>, vector<1x4x32xf32>
    %202 = vector.shape_cast %201 : vector<1x4x32xf32> to vector<4x32xf32>
    %203 = vector.shape_cast %199 : vector<4x32xf32> to vector<1x4x32xf32>
    tpu.vector_store %arg5[%200, %c0_49, %c0_50], %203 {strides = array<i32>} : memref<8x4x32xf32, #tpu.memory_space<vmem>>, vector<1x4x32xf32>,
    %c4_i32 = arith.constant 4 : i32
    %204 = arith.index_cast %c4_i32 : i32 to index
    %c0_51 = arith.constant 0 : index
    %c0_52 = arith.constant 0 : index
    %205 = vector.load %arg1[%204, %c0_51, %c0_52] : memref<8x4x128xf32, #tpu.memory_space<vmem>>, vector<1x4x128xf32>
    %206 = vector.shape_cast %205 : vector<1x4x128xf32> to vector<4x128xf32>
    %cst_53 = arith.constant dense<0.000000e+00> : vector<4x128xf32>
    %207 = tpu.matmul %199, %3, %cst_53 {dimension_numbers = #tpu.dot_dimension_numbers<[1], [0], [0], [1], [0, 0, 1, 1], [], []>} : vector<4x32xf32>, vector<32x128xf32>, vector<4x128xf32> -> vector<4x128xf32>
    %208 = arith.addf %206, %207 : vector<4x128xf32>
    %cst_54 = arith.constant dense<0.000000e+00> : vector<128xf32>
    %209 = vector.multi_reduction <add>, %208, %cst_54 [0] : vector<4x128xf32> to vector<128xf32>
    %210 = vector.shape_cast %209 : vector<128xf32> to vector<1x128xf32>
    %211 = vector.broadcast %cst_13 : f32 to vector<1x128xf32>
    %212 = arith.mulf %210, %211 : vector<1x128xf32>
    %213 = arith.mulf %208, %208 : vector<4x128xf32>
    %cst_55 = arith.constant dense<0.000000e+00> : vector<128xf32>
    %214 = vector.multi_reduction <add>, %213, %cst_55 [0] : vector<4x128xf32> to vector<128xf32>
    %215 = vector.shape_cast %214 : vector<128xf32> to vector<1x128xf32>
    %216 = vector.broadcast %cst_13 : f32 to vector<1x128xf32>
    %217 = arith.mulf %215, %216 : vector<1x128xf32>
    %218 = arith.mulf %212, %212 : vector<1x128xf32>
    %219 = arith.subf %217, %218 : vector<1x128xf32>
    %cst_56 = arith.constant 0.000000e+00 : f32
    %220 = vector.broadcast %cst_56 : f32 to vector<1x128xf32>
    %221 = arith.maximumf %219, %220 : vector<1x128xf32>
    %cst_57 = arith.constant 9.99999974E-6 : f32
    %222 = vector.broadcast %cst_57 : f32 to vector<1x128xf32>
    %223 = arith.addf %221, %222 : vector<1x128xf32>
    %224 = math.rsqrt %223 : vector<1x128xf32>
    %225 = arith.mulf %4, %224 : vector<1x128xf32>
    %226 = arith.mulf %212, %225 : vector<1x128xf32>
    %227 = arith.subf %5, %226 : vector<1x128xf32>
    %228 = vector.broadcast %225 : vector<1x128xf32> to vector<4x128xf32>
    %229 = arith.mulf %208, %228 : vector<4x128xf32>
    %230 = vector.broadcast %227 : vector<1x128xf32> to vector<4x128xf32>
    %231 = arith.addf %229, %230 : vector<4x128xf32>
    %232 = math.tanh %231 : vector<4x128xf32>
    %233 = vector.broadcast %14 : vector<1x128xf32> to vector<4x128xf32>
    %234 = arith.mulf %232, %233 : vector<4x128xf32>
    %235 = vector.broadcast %17 : vector<1x128xf32> to vector<4x128xf32>
    %236 = arith.addf %234, %235 : vector<4x128xf32>
    %237 = vector.extract_strided_slice %236 {offsets = [0, 0], sizes = [4, 32], strides = [1, 1]} : vector<4x128xf32> to vector<4x32xf32>
    %238 = vector.extract_strided_slice %236 {offsets = [0, 32], sizes = [4, 32], strides = [1, 1]} : vector<4x128xf32> to vector<4x32xf32>
    %239 = vector.extract_strided_slice %236 {offsets = [0, 64], sizes = [4, 32], strides = [1, 1]} : vector<4x128xf32> to vector<4x32xf32>
    %240 = vector.extract_strided_slice %236 {offsets = [0, 96], sizes = [4, 32], strides = [1, 1]} : vector<4x128xf32> to vector<4x32xf32>
    %241 = arith.mulf %238, %197 : vector<4x32xf32>
    %242 = arith.mulf %237, %239 : vector<4x32xf32>
    %243 = arith.addf %241, %242 : vector<4x32xf32>
    %244 = math.tanh %243 : vector<4x32xf32>
    %245 = arith.mulf %240, %244 : vector<4x32xf32>
    %246 = arith.index_cast %c4_i32 : i32 to index
    %c0_58 = arith.constant 0 : index
    %c0_59 = arith.constant 0 : index
    %247 = vector.load %arg5[%246, %c0_58, %c0_59] : memref<8x4x32xf32, #tpu.memory_space<vmem>>, vector<1x4x32xf32>
    %248 = vector.shape_cast %247 : vector<1x4x32xf32> to vector<4x32xf32>
    %249 = vector.shape_cast %245 : vector<4x32xf32> to vector<1x4x32xf32>
    tpu.vector_store %arg5[%246, %c0_58, %c0_59], %249 {strides = array<i32>} : memref<8x4x32xf32, #tpu.memory_space<vmem>>, vector<1x4x32xf32>,
    %c5_i32 = arith.constant 5 : i32
    %250 = arith.index_cast %c5_i32 : i32 to index
    %c0_60 = arith.constant 0 : index
    %c0_61 = arith.constant 0 : index
    %251 = vector.load %arg1[%250, %c0_60, %c0_61] : memref<8x4x128xf32, #tpu.memory_space<vmem>>, vector<1x4x128xf32>
    %252 = vector.shape_cast %251 : vector<1x4x128xf32> to vector<4x128xf32>
    %cst_62 = arith.constant dense<0.000000e+00> : vector<4x128xf32>
    %253 = tpu.matmul %245, %3, %cst_62 {dimension_numbers = #tpu.dot_dimension_numbers<[1], [0], [0], [1], [0, 0, 1, 1], [], []>} : vector<4x32xf32>, vector<32x128xf32>, vector<4x128xf32> -> vector<4x128xf32>
    %254 = arith.addf %252, %253 : vector<4x128xf32>
    %cst_63 = arith.constant dense<0.000000e+00> : vector<128xf32>
    %255 = vector.multi_reduction <add>, %254, %cst_63 [0] : vector<4x128xf32> to vector<128xf32>
    %256 = vector.shape_cast %255 : vector<128xf32> to vector<1x128xf32>
    %257 = vector.broadcast %cst_13 : f32 to vector<1x128xf32>
    %258 = arith.mulf %256, %257 : vector<1x128xf32>
    %259 = arith.mulf %254, %254 : vector<4x128xf32>
    %cst_64 = arith.constant dense<0.000000e+00> : vector<128xf32>
    %260 = vector.multi_reduction <add>, %259, %cst_64 [0] : vector<4x128xf32> to vector<128xf32>
    %261 = vector.shape_cast %260 : vector<128xf32> to vector<1x128xf32>
    %262 = vector.broadcast %cst_13 : f32 to vector<1x128xf32>
    %263 = arith.mulf %261, %262 : vector<1x128xf32>
    %264 = arith.mulf %258, %258 : vector<1x128xf32>
    %265 = arith.subf %263, %264 : vector<1x128xf32>
    %cst_65 = arith.constant 0.000000e+00 : f32
    %266 = vector.broadcast %cst_65 : f32 to vector<1x128xf32>
    %267 = arith.maximumf %265, %266 : vector<1x128xf32>
    %cst_66 = arith.constant 9.99999974E-6 : f32
    %268 = vector.broadcast %cst_66 : f32 to vector<1x128xf32>
    %269 = arith.addf %267, %268 : vector<1x128xf32>
    %270 = math.rsqrt %269 : vector<1x128xf32>
    %271 = arith.mulf %4, %270 : vector<1x128xf32>
    %272 = arith.mulf %258, %271 : vector<1x128xf32>
    %273 = arith.subf %5, %272 : vector<1x128xf32>
    %274 = vector.broadcast %271 : vector<1x128xf32> to vector<4x128xf32>
    %275 = arith.mulf %254, %274 : vector<4x128xf32>
    %276 = vector.broadcast %273 : vector<1x128xf32> to vector<4x128xf32>
    %277 = arith.addf %275, %276 : vector<4x128xf32>
    %278 = math.tanh %277 : vector<4x128xf32>
    %279 = vector.broadcast %14 : vector<1x128xf32> to vector<4x128xf32>
    %280 = arith.mulf %278, %279 : vector<4x128xf32>
    %281 = vector.broadcast %17 : vector<1x128xf32> to vector<4x128xf32>
    %282 = arith.addf %280, %281 : vector<4x128xf32>
    %283 = vector.extract_strided_slice %282 {offsets = [0, 0], sizes = [4, 32], strides = [1, 1]} : vector<4x128xf32> to vector<4x32xf32>
    %284 = vector.extract_strided_slice %282 {offsets = [0, 32], sizes = [4, 32], strides = [1, 1]} : vector<4x128xf32> to vector<4x32xf32>
    %285 = vector.extract_strided_slice %282 {offsets = [0, 64], sizes = [4, 32], strides = [1, 1]} : vector<4x128xf32> to vector<4x32xf32>
    %286 = vector.extract_strided_slice %282 {offsets = [0, 96], sizes = [4, 32], strides = [1, 1]} : vector<4x128xf32> to vector<4x32xf32>
    %287 = arith.mulf %284, %243 : vector<4x32xf32>
    %288 = arith.mulf %283, %285 : vector<4x32xf32>
    %289 = arith.addf %287, %288 : vector<4x32xf32>
    %290 = math.tanh %289 : vector<4x32xf32>
    %291 = arith.mulf %286, %290 : vector<4x32xf32>
    %292 = arith.index_cast %c5_i32 : i32 to index
    %c0_67 = arith.constant 0 : index
    %c0_68 = arith.constant 0 : index
    %293 = vector.load %arg5[%292, %c0_67, %c0_68] : memref<8x4x32xf32, #tpu.memory_space<vmem>>, vector<1x4x32xf32>
    %294 = vector.shape_cast %293 : vector<1x4x32xf32> to vector<4x32xf32>
    %295 = vector.shape_cast %291 : vector<4x32xf32> to vector<1x4x32xf32>
    tpu.vector_store %arg5[%292, %c0_67, %c0_68], %295 {strides = array<i32>} : memref<8x4x32xf32, #tpu.memory_space<vmem>>, vector<1x4x32xf32>,
    %c6_i32 = arith.constant 6 : i32
    %296 = arith.index_cast %c6_i32 : i32 to index
    %c0_69 = arith.constant 0 : index
    %c0_70 = arith.constant 0 : index
    %297 = vector.load %arg1[%296, %c0_69, %c0_70] : memref<8x4x128xf32, #tpu.memory_space<vmem>>, vector<1x4x128xf32>
    %298 = vector.shape_cast %297 : vector<1x4x128xf32> to vector<4x128xf32>
    %cst_71 = arith.constant dense<0.000000e+00> : vector<4x128xf32>
    %299 = tpu.matmul %291, %3, %cst_71 {dimension_numbers = #tpu.dot_dimension_numbers<[1], [0], [0], [1], [0, 0, 1, 1], [], []>} : vector<4x32xf32>, vector<32x128xf32>, vector<4x128xf32> -> vector<4x128xf32>
    %300 = arith.addf %298, %299 : vector<4x128xf32>
    %cst_72 = arith.constant dense<0.000000e+00> : vector<128xf32>
    %301 = vector.multi_reduction <add>, %300, %cst_72 [0] : vector<4x128xf32> to vector<128xf32>
    %302 = vector.shape_cast %301 : vector<128xf32> to vector<1x128xf32>
    %303 = vector.broadcast %cst_13 : f32 to vector<1x128xf32>
    %304 = arith.mulf %302, %303 : vector<1x128xf32>
    %305 = arith.mulf %300, %300 : vector<4x128xf32>
    %cst_73 = arith.constant dense<0.000000e+00> : vector<128xf32>
    %306 = vector.multi_reduction <add>, %305, %cst_73 [0] : vector<4x128xf32> to vector<128xf32>
    %307 = vector.shape_cast %306 : vector<128xf32> to vector<1x128xf32>
    %308 = vector.broadcast %cst_13 : f32 to vector<1x128xf32>
    %309 = arith.mulf %307, %308 : vector<1x128xf32>
    %310 = arith.mulf %304, %304 : vector<1x128xf32>
    %311 = arith.subf %309, %310 : vector<1x128xf32>
    %cst_74 = arith.constant 0.000000e+00 : f32
    %312 = vector.broadcast %cst_74 : f32 to vector<1x128xf32>
    %313 = arith.maximumf %311, %312 : vector<1x128xf32>
    %cst_75 = arith.constant 9.99999974E-6 : f32
    %314 = vector.broadcast %cst_75 : f32 to vector<1x128xf32>
    %315 = arith.addf %313, %314 : vector<1x128xf32>
    %316 = math.rsqrt %315 : vector<1x128xf32>
    %317 = arith.mulf %4, %316 : vector<1x128xf32>
    %318 = arith.mulf %304, %317 : vector<1x128xf32>
    %319 = arith.subf %5, %318 : vector<1x128xf32>
    %320 = vector.broadcast %317 : vector<1x128xf32> to vector<4x128xf32>
    %321 = arith.mulf %300, %320 : vector<4x128xf32>
    %322 = vector.broadcast %319 : vector<1x128xf32> to vector<4x128xf32>
    %323 = arith.addf %321, %322 : vector<4x128xf32>
    %324 = math.tanh %323 : vector<4x128xf32>
    %325 = vector.broadcast %14 : vector<1x128xf32> to vector<4x128xf32>
    %326 = arith.mulf %324, %325 : vector<4x128xf32>
    %327 = vector.broadcast %17 : vector<1x128xf32> to vector<4x128xf32>
    %328 = arith.addf %326, %327 : vector<4x128xf32>
    %329 = vector.extract_strided_slice %328 {offsets = [0, 0], sizes = [4, 32], strides = [1, 1]} : vector<4x128xf32> to vector<4x32xf32>
    %330 = vector.extract_strided_slice %328 {offsets = [0, 32], sizes = [4, 32], strides = [1, 1]} : vector<4x128xf32> to vector<4x32xf32>
    %331 = vector.extract_strided_slice %328 {offsets = [0, 64], sizes = [4, 32], strides = [1, 1]} : vector<4x128xf32> to vector<4x32xf32>
    %332 = vector.extract_strided_slice %328 {offsets = [0, 96], sizes = [4, 32], strides = [1, 1]} : vector<4x128xf32> to vector<4x32xf32>
    %333 = arith.mulf %330, %289 : vector<4x32xf32>
    %334 = arith.mulf %329, %331 : vector<4x32xf32>
    %335 = arith.addf %333, %334 : vector<4x32xf32>
    %336 = math.tanh %335 : vector<4x32xf32>
    %337 = arith.mulf %332, %336 : vector<4x32xf32>
    %338 = arith.index_cast %c6_i32 : i32 to index
    %c0_76 = arith.constant 0 : index
    %c0_77 = arith.constant 0 : index
    %339 = vector.load %arg5[%338, %c0_76, %c0_77] : memref<8x4x32xf32, #tpu.memory_space<vmem>>, vector<1x4x32xf32>
    %340 = vector.shape_cast %339 : vector<1x4x32xf32> to vector<4x32xf32>
    %341 = vector.shape_cast %337 : vector<4x32xf32> to vector<1x4x32xf32>
    tpu.vector_store %arg5[%338, %c0_76, %c0_77], %341 {strides = array<i32>} : memref<8x4x32xf32, #tpu.memory_space<vmem>>, vector<1x4x32xf32>,
    %c7_i32 = arith.constant 7 : i32
    %342 = arith.index_cast %c7_i32 : i32 to index
    %c0_78 = arith.constant 0 : index
    %c0_79 = arith.constant 0 : index
    %343 = vector.load %arg1[%342, %c0_78, %c0_79] : memref<8x4x128xf32, #tpu.memory_space<vmem>>, vector<1x4x128xf32>
    %344 = vector.shape_cast %343 : vector<1x4x128xf32> to vector<4x128xf32>
    %cst_80 = arith.constant dense<0.000000e+00> : vector<4x128xf32>
    %345 = tpu.matmul %337, %3, %cst_80 {dimension_numbers = #tpu.dot_dimension_numbers<[1], [0], [0], [1], [0, 0, 1, 1], [], []>} : vector<4x32xf32>, vector<32x128xf32>, vector<4x128xf32> -> vector<4x128xf32>
    %346 = arith.addf %344, %345 : vector<4x128xf32>
    %cst_81 = arith.constant dense<0.000000e+00> : vector<128xf32>
    %347 = vector.multi_reduction <add>, %346, %cst_81 [0] : vector<4x128xf32> to vector<128xf32>
    %348 = vector.shape_cast %347 : vector<128xf32> to vector<1x128xf32>
    %349 = vector.broadcast %cst_13 : f32 to vector<1x128xf32>
    %350 = arith.mulf %348, %349 : vector<1x128xf32>
    %351 = arith.mulf %346, %346 : vector<4x128xf32>
    %cst_82 = arith.constant dense<0.000000e+00> : vector<128xf32>
    %352 = vector.multi_reduction <add>, %351, %cst_82 [0] : vector<4x128xf32> to vector<128xf32>
    %353 = vector.shape_cast %352 : vector<128xf32> to vector<1x128xf32>
    %354 = vector.broadcast %cst_13 : f32 to vector<1x128xf32>
    %355 = arith.mulf %353, %354 : vector<1x128xf32>
    %356 = arith.mulf %350, %350 : vector<1x128xf32>
    %357 = arith.subf %355, %356 : vector<1x128xf32>
    %cst_83 = arith.constant 0.000000e+00 : f32
    %358 = vector.broadcast %cst_83 : f32 to vector<1x128xf32>
    %359 = arith.maximumf %357, %358 : vector<1x128xf32>
    %cst_84 = arith.constant 9.99999974E-6 : f32
    %360 = vector.broadcast %cst_84 : f32 to vector<1x128xf32>
    %361 = arith.addf %359, %360 : vector<1x128xf32>
    %362 = math.rsqrt %361 : vector<1x128xf32>
    %363 = arith.mulf %4, %362 : vector<1x128xf32>
    %364 = arith.mulf %350, %363 : vector<1x128xf32>
    %365 = arith.subf %5, %364 : vector<1x128xf32>
    %366 = vector.broadcast %363 : vector<1x128xf32> to vector<4x128xf32>
    %367 = arith.mulf %346, %366 : vector<4x128xf32>
    %368 = vector.broadcast %365 : vector<1x128xf32> to vector<4x128xf32>
    %369 = arith.addf %367, %368 : vector<4x128xf32>
    %370 = math.tanh %369 : vector<4x128xf32>
    %371 = vector.broadcast %14 : vector<1x128xf32> to vector<4x128xf32>
    %372 = arith.mulf %370, %371 : vector<4x128xf32>
    %373 = vector.broadcast %17 : vector<1x128xf32> to vector<4x128xf32>
    %374 = arith.addf %372, %373 : vector<4x128xf32>
    %375 = vector.extract_strided_slice %374 {offsets = [0, 0], sizes = [4, 32], strides = [1, 1]} : vector<4x128xf32> to vector<4x32xf32>
    %376 = vector.extract_strided_slice %374 {offsets = [0, 32], sizes = [4, 32], strides = [1, 1]} : vector<4x128xf32> to vector<4x32xf32>
    %377 = vector.extract_strided_slice %374 {offsets = [0, 64], sizes = [4, 32], strides = [1, 1]} : vector<4x128xf32> to vector<4x32xf32>
    %378 = vector.extract_strided_slice %374 {offsets = [0, 96], sizes = [4, 32], strides = [1, 1]} : vector<4x128xf32> to vector<4x32xf32>
    %379 = arith.mulf %376, %335 : vector<4x32xf32>
    %380 = arith.mulf %375, %377 : vector<4x32xf32>
    %381 = arith.addf %379, %380 : vector<4x32xf32>
    %382 = math.tanh %381 : vector<4x32xf32>
    %383 = arith.mulf %378, %382 : vector<4x32xf32>
    %384 = arith.index_cast %c7_i32 : i32 to index
    %c0_85 = arith.constant 0 : index
    %c0_86 = arith.constant 0 : index
    %385 = vector.load %arg5[%384, %c0_85, %c0_86] : memref<8x4x32xf32, #tpu.memory_space<vmem>>, vector<1x4x32xf32>
    %386 = vector.shape_cast %385 : vector<1x4x32xf32> to vector<4x32xf32>
    %387 = vector.shape_cast %383 : vector<4x32xf32> to vector<1x4x32xf32>
    tpu.vector_store %arg5[%384, %c0_85, %c0_86], %387 {strides = array<i32>} : memref<8x4x32xf32, #tpu.memory_space<vmem>>, vector<1x4x32xf32>,
    %c8_i32 = arith.constant 8 : i32
    %c0_87 = arith.constant 0 : index
    %c0_88 = arith.constant 0 : index
    %388 = vector.load %arg8[%c0_87, %c0_88] : memref<4x32xf32, #tpu.memory_space<vmem>>, vector<4x32xf32>
    tpu.vector_store %arg8[%c0_87, %c0_88], %383 {strides = array<i32>} : memref<4x32xf32, #tpu.memory_space<vmem>>, vector<4x32xf32>,
    %c0_89 = arith.constant 0 : index
    %c0_90 = arith.constant 0 : index
    %389 = vector.load %arg9[%c0_89, %c0_90] : memref<4x32xf32, #tpu.memory_space<vmem>>, vector<4x32xf32>
    tpu.vector_store %arg9[%c0_89, %c0_90], %381 {strides = array<i32>} : memref<4x32xf32, #tpu.memory_space<vmem>>, vector<4x32xf32>,
    %c0_91 = arith.constant 0 : index
    %c0_92 = arith.constant 0 : index
    %390 = vector.load %arg6[%c0_91, %c0_92] : memref<4x32xf32, #tpu.memory_space<vmem>>, vector<4x32xf32>
    tpu.vector_store %arg6[%c0_91, %c0_92], %383 {strides = array<i32>} : memref<4x32xf32, #tpu.memory_space<vmem>>, vector<4x32xf32>,
    %c0_93 = arith.constant 0 : index
    %c0_94 = arith.constant 0 : index
    %391 = vector.load %arg7[%c0_93, %c0_94] : memref<4x32xf32, #tpu.memory_space<vmem>>, vector<4x32xf32>
    tpu.vector_store %arg7[%c0_93, %c0_94], %381 {strides = array<i32>} : memref<4x32xf32, #tpu.memory_space<vmem>>, vector<4x32xf32>,
    return
  }
  func.func @transform_0(%arg0: i32) -> (i32, i32, i32) {
    %c0_i32 = arith.constant 0 : i32
    %c0_i32_0 = arith.constant 0 : i32
    %c0_i32_1 = arith.constant 0 : i32
    return %arg0, %c0_i32, %c0_i32_0 : i32, i32, i32
  }
  func.func @transform_1(%arg0: i32) -> (i32, i32) {
    %c0_i32 = arith.constant 0 : i32
    %c0_i32_0 = arith.constant 0 : i32
    %c0_i32_1 = arith.constant 0 : i32
    return %c0_i32, %c0_i32_0 : i32, i32
  }
  func.func @transform_2(%arg0: i32) -> (i32, i32) {
    %c0_i32 = arith.constant 0 : i32
    %c0_i32_0 = arith.constant 0 : i32
    %c0_i32_1 = arith.constant 0 : i32
    return %c0_i32, %c0_i32_0 : i32, i32
  }
  func.func @transform_3(%arg0: i32) -> (i32, i32) {
    %c0_i32 = arith.constant 0 : i32
    %c0_i32_0 = arith.constant 0 : i32
    %c0_i32_1 = arith.constant 0 : i32
    return %c0_i32, %c0_i32_0 : i32, i32
  }
  func.func @transform_4(%arg0: i32) -> (i32, i32, i32) {
    %c0_i32 = arith.constant 0 : i32
    %c0_i32_0 = arith.constant 0 : i32
    %c0_i32_1 = arith.constant 0 : i32
    return %arg0, %c0_i32, %c0_i32_0 : i32, i32, i32
  }
  func.func @transform_5(%arg0: i32) -> (i32, i32) {
    %c0_i32 = arith.constant 0 : i32
    %c0_i32_0 = arith.constant 0 : i32
    %c0_i32_1 = arith.constant 0 : i32
    return %c0_i32, %c0_i32_0 : i32, i32
  }
  func.func @transform_6(%arg0: i32) -> (i32, i32) {
    %c0_i32 = arith.constant 0 : i32
    %c0_i32_0 = arith.constant 0 : i32
    %c0_i32_1 = arith.constant 0 : i32
    return %c0_i32, %c0_i32_0 : i32, i32
  }
}

</mosaic_0001>

<bundles_post_ra>
// kernel: tpu_custom_call.1
= control target key start
LH: loop header
LB: loop body
LE: loop exit
PB: predicated region body
PF: predicated region fallthrough
CT: control target
= control target key end

     0   :  { %12 = vsyncpa [#allocation5], 0  ;;  %s1935_s0 = inlined_call_operand.hbm [shape: f32[8,4,128], index: 0, kind: input, shape index: {}]   ;;  %s1936_s1 = inlined_call_operand.hbm [shape: f32[32,128], index: 1, kind: input, shape index: {}]   ;;  %s1937_s2 = inlined_call_operand.vmem [shape: f32[1,128], index: 2, kind: input, shape index: {}]   ;;  %s1938_s3 = inlined_call_operand.vmem [shape: f32[1,128], index: 3, kind: input, shape index: {}]   ;;  %s1939_s4 = inlined_call_operand.hbm [shape: f32[8,4,32], index: 4, kind: output, shape index: {0}]   ;;  %s1940_s5 = inlined_call_operand.hbm [shape: f32[4,32], index: 5, kind: output, shape index: {1}]   ;;  %s1941_s6 = inlined_call_operand.hbm [shape: f32[4,32], index: 6, kind: output, shape index: {2}]  }
   0x1   :  { %13 = vsyncpa [#allocation8], 0 }
   0x2   :  { %14 = vsyncpa [#allocation6], 0 }
   0x3   :  { %15 = vsyncpa [#allocation11], 0  ;;  %s1616_s21 = smov [#allocation4]   ;;  %s1498_s25 = scalar_lea.hbm %s1935_s0, 512 }
   0x4   :  { %s21_s22 = sshll.u32 %s1616_s21, 4  ;;  %p1499_p0 = scmp.ne.s32.totalorder %s1935_s0, %s1498_s25  ;;  %s22_s22 = int_to_ptr.vmem [resolvable:$true] %s21_s22 }
   0x5   :  { %p1502_p1 = scmp.lt.u32.totalorder %s1498_s25, %s1935_s0 }
   0x7   :  { %p1504_p2 = pnand %p1502_p1, %p1499_p0 }
   0x9   :  { %1507 = shalt.err (!%p1504_p2)
}
   0xa   :  { %s1508_s30 = scalar_lea.vmem %s22_s22, 512  ;;  %p1513_p4 = scmp.lt.s32.totalorder %s22_s22, %s22_s22 }
   0xb   :  { %p1509_p3 = scmp.ne.s32.totalorder %s22_s22, %s1508_s30  ;;  %p1514_p5 = scmp.lt.s32.totalorder %s1508_s30, %s1508_s30 }
   0xd   :  { %p1515_p6 = por %p1514_p5, %p1513_p4 }
   0xf   :  { %p1516_p7 = pnand %p1515_p6, %p1509_p3 }
  0x11   :  { %1519 = shalt.err (!%p1516_p7)
}
  0x12   :  { %s1617_s7 = smov 64   ;;  %s1618_s8 = smov 4  }
  0x13   :  { %27 = dma.hbm_to_vmem [thread:$0]  %s1935_s0, 512, %s22_s22, [#allocation5], %s1617_s7, %s1617_s7, %s1618_s8  }
  0x14   :  { %s1619_s11 = smov [#allocation7]   ;;  %s1520_s15 = scalar_lea.hbm %s1936_s1, 512 }
  0x15   :  { %s33_s12 = sshll.u32 %s1619_s11, 4  ;;  %p1521_p8 = scmp.ne.s32.totalorder %s1936_s1, %s1520_s15  ;;  %s34_s12 = int_to_ptr.vmem [resolvable:$true] %s33_s12 }
  0x16   :  { %p1524_p9 = scmp.lt.u32.totalorder %s1520_s15, %s1936_s1 }
  0x18   :  { %p1526_p10 = pnand %p1524_p9, %p1521_p8 }
  0x1a   :  { %1529 = shalt.err (!%p1526_p10)
}
  0x1b   :  { %s1530_s20 = scalar_lea.vmem %s34_s12, 512  ;;  %p1535_p12 = scmp.lt.s32.totalorder %s34_s12, %s34_s12 }
  0x1c   :  { %p1531_p11 = scmp.ne.s32.totalorder %s34_s12, %s1530_s20  ;;  %p1536_p13 = scmp.lt.s32.totalorder %s1530_s20, %s1530_s20 }
  0x1e   :  { %p1537_p0 = por %p1536_p13, %p1535_p12 }
  0x20   :  { %p1538_p1 = pnand %p1537_p0, %p1531_p11 }
  0x22   :  { %1541 = shalt.err (!%p1538_p1)
}
  0x23   :  { %s1620_s0 = smov 128   ;;  %s1621_s21 = smov 8  }
  0x24   :  { %39 = dma.hbm_to_vmem [thread:$0]  %s1936_s1, 512, %s34_s12, [#allocation8], %s1620_s0, %s1620_s0, %s1621_s21  }
  0x25   :  { %1608 = dma.done.wait [#allocation5], 512  }
  0x26   :  { %1609 = vsyncadd [#allocation5], 4294966784 }
  0x27   :  { %1610 = dma.done.wait [#allocation8], 512  }
  0x28   :  { %1611 = vsyncadd [#allocation8], 4294966784  ;;  %vm54_vm0 = vcmask 257024   ;;  %v1622_v0 = vmov 0.0|0.0   ;;  %vm1623_vm1 = vmmov 0   ;;  %v1624_v1 = vmov 0.0  }
  0x29   :  { %1387 = vmatprep.subr.bf16.mxu0 %v1622_v0  ;;  %1307 = vmatprep.mubr.msk.f32.mxu0 %vm1623_vm1, %v1624_v1  ;;  %55 = vst.msk [vmem:[#allocation2] sm:$0xf] %vm54_vm0, %v1624_v1  ;;  %56 = vst.msk [vmem:[#allocation3] sm:$0xf] %vm54_vm0, %v1624_v1  ;;  %v57_v2 = vld [vmem:[#allocation7] sm:$0xff]  ;;  %v58_v3 = vld [vmem:[#allocation7 + $0x8] sm:$0xff]  ;;  %v63_v34 = vlaneseq }
  0x2a   :  { %1393 = vmatprep.subr.bf16.mxu1 %v1622_v0  ;;  %1318 = vmatprep.mubr.msk.f32.mxu1 %vm1623_vm1, %v1624_v1  ;;  %v59_v4 = vld [vmem:[#allocation7 + $0x10] sm:$0xff]  ;;  %v1703_v5 = vpack.c.bf16 %v58_v3, %v57_v2  ;;  %v60_v6 = vld [vmem:[#allocation7 + $0x18] sm:$0xff]  ;;  %vm73_vm2 = vcmask 261120   ;;  %v72_v9 = vld [vmem:[#allocation4] sm:$0xf]  ;;  %vm148_vm3 = vcmask 1043456  }
  0x2b   :  { %v1706_v7 = vpack.c.bf16 %v60_v6, %v59_v4  ;;  %v176_v35 = vshrl.u32 %v63_v34, 7  ;;  %v1727_v36 = vld [vmem:[%s1937_s2] sm:$0x1]  ;;  %v64_v47 = vand.u32 127, %v63_v34  ;;  %v1625_v48 = vmov 0.5   ;;  %s1626_s2 = smov 32  }
  0x2c   :  { %1389 = vmatpush3.bf16.msra.mxu0 %v1703_v5  ;;  %1395 = vmatpush3.bf16.msra.mxu1 %v1703_v5  ;;  %v1735_v40 = vld [vmem:[%s1938_s3] sm:$0x1]  ;;  %v219_v3 = vld [vmem:[#allocation4 + $0x4] sm:$0xf]  ;;  %s1627_s3 = smov 96   ;;  %s1628_s27 = smov [#allocation10]  }
  0x2d   :  { %1390 = vmatprep.subr.bf16.mxu0 %v1622_v0  ;;  %1396 = vmatprep.subr.bf16.mxu1 %v1622_v0  ;;  %v1729_v37 = vsub.s32 0, %v176_v35  ;;  %vm65_vm4 = vcmp.ge.s32.totalorder %v64_v47, 64  ;;  %vm66_vm5 = vcmp.lt.s32.totalorder %v64_v47, 96  ;;  %s1224_s28 = sshll.u32 %s1628_s27, 4  ;;  %s1629_s29 = smov [#allocation9]   ;;  %s1225_s28 = int_to_ptr.vmem [resolvable:$true] %s1224_s28 }
  0x2e   :  { %vm67_vm6 = vmand %vm65_vm4, %vm66_vm5  ;;  %s1211_s30 = sshll.u32 %s1629_s29, 4  ;;  %s1630_s9 = smov [#allocation12]   ;;  %s1879_s30 = int_to_ptr.vmem [resolvable:$true] %s1211_s30 }
  0x2f   :  { %v1740_v49 = vsel %vm67_vm6, 1.0, %v1625_v48  ;;  %v1742_v51 = vsel %vm67_vm6, 0.0, %v1625_v48  ;;  %s1234_s10 = sshll.u32 %s1630_s9, 4  ;;  %s1542_s11 = scalar_lea.vmem %s1225_s28, 64  ;;  %s1884_s10 = int_to_ptr.vmem [resolvable:$true] %s1234_s10 }
  0x30   :  { %1392 = vmatpush3.bf16.msra.mxu0 %v1706_v7  ;;  %v70_v8 = vld [vmem:[#allocation2] sm:$0xf]  ;;  %1398 = vmatpush3.bf16.msra.mxu1 %v1706_v7  ;;  %v71_v54 = vld [vmem:[#allocation3] sm:$0xf]  ;;  %p1543_p2 = scmp.ne.s32.totalorder %s1225_s28, %s1542_s11  ;;  %p1547_p3 = scmp.lt.s32.totalorder %s1225_s28, %s1225_s28 }
  0x31   :  { %1399 = vmatprep.subr.bf16.mxu0 %v1622_v0  ;;  %1405 = vmatprep.subr.bf16.mxu1 %v1622_v0  ;;  %p1548_p4 = scmp.lt.s32.totalorder %s1542_s11, %s1542_s11 }
  0x33   :  { %1308 = vmatmul.mubr.msk.f32.vlgmr.msra.gmra.mrb[0].mxu0 %vm73_vm2, %v70_v8  ;;  %p1549_p5 = por %p1548_p4, %p1547_p3 }
  0x34   :  { %1401 = vmatpush3.bf16.msra.mxu0 %v1703_v5  ;;  %1329 = vmatprep.mubr.msk.f32.mxu0 %vm1623_vm1, %v1624_v1 }
  0x35   :  { %1402 = vmatprep.subr.bf16.mxu0 %v1622_v0  ;;  %p1550_p6 = pnand %p1549_p5, %p1543_p2 }
  0x38   :  { %1404 = vmatpush3.bf16.msra.mxu0 %v1706_v7 }
  0x39   :  { %1411 = vmatprep.subr.bf16.mxu0 %v1622_v0 }
 0x106   :  { %v143_v10 = vpop.f32.mrb[0].mxu0 }
 0x107   :  { %v147_v11 = vadd.f32 %v143_v10, %v72_v9  ;;  %v1309_v12 = vpop.f32.mrb[1].mxu0 }
 0x109   :  { %v149_v13 = vsel %vm148_vm3, %v147_v11, 0.0  ;;  %v157_v14 = vmul.f32 %v147_v11, %v147_v11 }
 0x10a   :  { %v150_v15 = vrot.slane %v149_v13, 4 }
 0x10b   :  { %v158_v16 = vsel %vm148_vm3, %v157_v14, 0.0 }
 0x10c   :  { %v151_v17 = vadd.f32 %v150_v15, %v149_v13  ;;  %v159_v18 = vrot.slane %v158_v16, 4 }
 0x10e   :  { %v152_v19 = vrot.slane %v151_v17, 2  ;;  %v160_v20 = vadd.f32 %v159_v18, %v158_v16 }
 0x110   :  { %v153_v21 = vadd.f32 %v152_v19, %v151_v17  ;;  %v161_v22 = vrot.slane %v160_v20, 2 }
 0x112   :  { %v154_v23 = vrot.slane %v153_v21, 1  ;;  %v162_v24 = vadd.f32 %v161_v22, %v160_v20 }
 0x114   :  { %v155_v25 = vadd.f32 %v154_v23, %v153_v21  ;;  %v163_v26 = vrot.slane %v162_v24, 1 }
 0x116   :  { %v156_v27 = vmul.f32 0.25, %v155_v25  ;;  %v164_v28 = vadd.f32 %v163_v26, %v162_v24 }
 0x118   :  { %v165_v29 = vmul.f32 0.25, %v164_v28  ;;  %v166_v30 = vmul.f32 %v156_v27, %v156_v27 }
 0x11a   :  { %v167_v31 = vsub.f32 %v165_v29, %v166_v30 }
 0x11c   :  { %v168_v32 = vmax.f32 %v167_v31, 0.0 }
 0x11e   :  { %v169_v33 = vadd.f32 1e-05, %v168_v32 }
 0x120   :  { %1450 = vrsqrt.f32 %v169_v33 }
 0x12a   :  { %v1451_v38 = vpop.eup %1450 }
 0x12b   :  { %v171_v39 = vmul.f32 %v1451_v38, %v1727_v36 }
 0x12d   :  { %v172_v41 = vmul.f32 %v171_v39, %v156_v27  ;;  %v178_v42 = vrot.slane %v171_v39, %v1729_v37 }
 0x12f   :  { %v173_v43 = vsub.f32 %v1735_v40, %v172_v41  ;;  %v180_v44 = vmul.f32 %v178_v42, %v147_v11 }
 0x131   :  { %v185_v45 = vrot.slane %v173_v43, %v1729_v37 }
 0x133   :  { %v187_v46 = vadd.f32 %v185_v45, %v180_v44 }
 0x135   :  { %1452 = vtanh.f32 %v187_v46 }
 0x13f   :  { %v1453_v50 = vpop.eup %1452 }
 0x140   :  { %v189_v52 = vmul.f32 %v1453_v50, %v1740_v49 }
 0x142   :  { %v190_v53 = vadd.f32 %v189_v52, %v1742_v51 }
 0x144   :  { %197 = vrot.lane.b32.xlu0 %v190_v53, %s1617_s7 }
 0x148   :  { %192 = vrot.lane.b32.xlu0 %v71_v54, %s1626_s2 }
 0x1b6   :  { %v198_v55 = vpop.permute.xlu0 %197 }
 0x1b7   :  { %v200_v56 = vmul.f32 %v198_v55, %v190_v53  ;;  %v359_v55 = vld [vmem:[#allocation4 + $0x8] sm:$0xf] }
 0x1b9   :  { %202 = vrot.lane.b32.xlu1 %v200_v56, %s1626_s2 }
 0x1ba   :  { %v193_v57 = vpop.permute.xlu0 %192 }
 0x1bb   :  { %v195_v58 = vmul.f32 %v193_v57, %v190_v53 }
 0x22b   :  { %v203_v59 = vpop.permute.xlu1 %202 }
 0x22c   :  { %v205_v60 = vadd.f32 %v203_v59, %v195_v58 }
 0x22e   :  { %1454 = vtanh.f32 %v205_v60 }
 0x238   :  { %v1455_v61 = vpop.eup %1454 }
 0x239   :  { %208 = vrot.lane.b32.xlu1 %v1455_v61, %s1617_s7 }
 0x2ab   :  { %v209_v62 = vpop.permute.xlu1 %208 }
 0x2ac   :  { %v211_v63 = vmul.f32 %v209_v62, %v190_v53 }
 0x2ae   :  { %213 = vrot.lane.b32.xlu0 %v211_v63, %s1626_s2 }
 0x320   :  { %v214_v2 = vpop.permute.xlu0 %213 }
 0x321   :  { %217 = vst.msk [vmem:[#allocation9] sm:$0xf] %vm54_vm0, %v214_v2  ;;  %1319 = vmatmul.mubr.msk.f32.vlgmr.msra.gmra.mrb[0].mxu1 %vm73_vm2, %v214_v2 }
 0x322   :  { %1407 = vmatpush3.bf16.msra.mxu1 %v1703_v5  ;;  %1340 = vmatprep.mubr.msk.f32.mxu1 %vm1623_vm1, %v1624_v1 }
 0x323   :  { %1408 = vmatprep.subr.bf16.mxu1 %v1622_v0 }
 0x326   :  { %1410 = vmatpush3.bf16.msra.mxu1 %v1706_v7 }
 0x327   :  { %1417 = vmatprep.subr.bf16.mxu1 %v1622_v0 }
 0x3f4   :  { %v288_v4 = vpop.f32.mrb[0].mxu1 }
 0x3f5   :  { %v292_v6 = vadd.f32 %v288_v4, %v219_v3  ;;  %v1320_v8 = vpop.f32.mrb[1].mxu1 }
 0x3f7   :  { %v293_v9 = vsel %vm148_vm3, %v292_v6, 0.0  ;;  %v301_v10 = vmul.f32 %v292_v6, %v292_v6 }
 0x3f8   :  { %v294_v11 = vrot.slane %v293_v9, 4 }
 0x3f9   :  { %v302_v12 = vsel %vm148_vm3, %v301_v10, 0.0 }
 0x3fa   :  { %v295_v13 = vadd.f32 %v294_v11, %v293_v9  ;;  %v303_v14 = vrot.slane %v302_v12, 4 }
 0x3fc   :  { %v296_v15 = vrot.slane %v295_v13, 2  ;;  %v304_v16 = vadd.f32 %v303_v14, %v302_v12 }
 0x3fe   :  { %v297_v17 = vadd.f32 %v296_v15, %v295_v13  ;;  %v305_v18 = vrot.slane %v304_v16, 2 }
 0x400   :  { %v298_v19 = vrot.slane %v297_v17, 1  ;;  %v306_v20 = vadd.f32 %v305_v18, %v304_v16 }
 0x402   :  { %v299_v21 = vadd.f32 %v298_v19, %v297_v17  ;;  %v307_v22 = vrot.slane %v306_v20, 1 }
 0x404   :  { %v300_v23 = vmul.f32 0.25, %v299_v21  ;;  %v308_v24 = vadd.f32 %v307_v22, %v306_v20 }
 0x406   :  { %v309_v25 = vmul.f32 0.25, %v308_v24  ;;  %v310_v26 = vmul.f32 %v300_v23, %v300_v23 }
 0x408   :  { %v311_v27 = vsub.f32 %v309_v25, %v310_v26 }
 0x40a   :  { %v312_v28 = vmax.f32 %v311_v27, 0.0 }
 0x40c   :  { %v313_v29 = vadd.f32 1e-05, %v312_v28 }
 0x40e   :  { %1456 = vrsqrt.f32 %v313_v29 }
 0x418   :  { %v1457_v30 = vpop.eup %1456 }
 0x419   :  { %v315_v31 = vmul.f32 %v1457_v30, %v1727_v36 }
 0x41b   :  { %v316_v32 = vmul.f32 %v315_v31, %v300_v23  ;;  %v322_v33 = vrot.slane %v315_v31, %v1729_v37 }
 0x41d   :  { %v317_v34 = vsub.f32 %v1735_v40, %v316_v32  ;;  %v324_v35 = vmul.f32 %v322_v33, %v292_v6 }
 0x41f   :  { %v329_v38 = vrot.slane %v317_v34, %v1729_v37 }
 0x421   :  { %v331_v39 = vadd.f32 %v329_v38, %v324_v35 }
 0x423   :  { %1458 = vtanh.f32 %v331_v39 }
 0x42d   :  { %v1459_v41 = vpop.eup %1458 }
 0x42e   :  { %v333_v42 = vmul.f32 %v1459_v41, %v1740_v49 }
 0x430   :  { %v334_v43 = vadd.f32 %v333_v42, %v1742_v51 }
 0x432   :  { %337 = vrot.lane.b32.xlu1 %v334_v43, %s1617_s7  ;;  %v335_v46 = vmul.f32 %v334_v43, %v205_v60 }
 0x4a4   :  { %v338_v44 = vpop.permute.xlu1 %337 }
 0x4a5   :  { %v340_v45 = vmul.f32 %v338_v44, %v334_v43 }
 0x4a7   :  { %342 = vrot.lane.b32.xlu0 %v340_v45, %s1626_s2 }
 0x519   :  { %v343_v47 = vpop.permute.xlu0 %342 }
 0x51a   :  { %v345_v48 = vadd.f32 %v343_v47, %v335_v46 }
 0x51c   :  { %1460 = vtanh.f32 %v345_v48 }
 0x526   :  { %v1461_v50 = vpop.eup %1460 }
 0x527   :  { %348 = vrot.lane.b32.xlu1 %v1461_v50, %s1617_s7 }
 0x599   :  { %v349_v52 = vpop.permute.xlu1 %348 }
 0x59a   :  { %v351_v53 = vmul.f32 %v349_v52, %v334_v43  ;;  %v499_v43 = vld [vmem:[#allocation4 + $0xc] sm:$0xf] }
 0x59c   :  { %353 = vrot.lane.b32.xlu0 %v351_v53, %s1626_s2 }
 0x60e   :  { %v354_v54 = vpop.permute.xlu0 %353 }
 0x60f   :  { %357 = vst.msk [vmem:[#allocation9 + $0x4] sm:$0xf] %vm54_vm0, %v354_v54  ;;  %1330 = vmatmul.mubr.msk.f32.vlgmr.msra.gmra.mrb[2].mxu0 %vm73_vm2, %v354_v54 }
 0x610   :  { %1413 = vmatpush3.bf16.msra.mxu0 %v1703_v5  ;;  %1351 = vmatprep.mubr.msk.f32.mxu0 %vm1623_vm1, %v1624_v1 }
 0x611   :  { %1414 = vmatprep.subr.bf16.mxu0 %v1622_v0 }
 0x614   :  { %1416 = vmatpush3.bf16.msra.mxu0 %v1706_v7 }
 0x615   :  { %1423 = vmatprep.subr.bf16.mxu0 %v1622_v0 }
 0x6e2   :  { %v428_v56 = vpop.f32.mrb[2].mxu0 }
 0x6e3   :  { %v432_v57 = vadd.f32 %v428_v56, %v359_v55  ;;  %v1331_v58 = vpop.f32.mrb[3].mxu0 }
 0x6e5   :  { %v433_v59 = vsel %vm148_vm3, %v432_v57, 0.0  ;;  %v441_v60 = vmul.f32 %v432_v57, %v432_v57 }
 0x6e6   :  { %v434_v61 = vrot.slane %v433_v59, 4 }
 0x6e7   :  { %v442_v62 = vsel %vm148_vm3, %v441_v60, 0.0 }
 0x6e8   :  { %v435_v63 = vadd.f32 %v434_v61, %v433_v59  ;;  %v443_v2 = vrot.slane %v442_v62, 4 }
 0x6ea   :  { %v436_v3 = vrot.slane %v435_v63, 2  ;;  %v444_v4 = vadd.f32 %v443_v2, %v442_v62 }
 0x6ec   :  { %v437_v6 = vadd.f32 %v436_v3, %v435_v63  ;;  %v445_v8 = vrot.slane %v444_v4, 2 }
 0x6ee   :  { %v438_v9 = vrot.slane %v437_v6, 1  ;;  %v446_v10 = vadd.f32 %v445_v8, %v444_v4 }
 0x6f0   :  { %v439_v11 = vadd.f32 %v438_v9, %v437_v6  ;;  %v447_v12 = vrot.slane %v446_v10, 1 }
 0x6f2   :  { %v440_v13 = vmul.f32 0.25, %v439_v11  ;;  %v448_v14 = vadd.f32 %v447_v12, %v446_v10 }
 0x6f4   :  { %v449_v15 = vmul.f32 0.25, %v448_v14  ;;  %v450_v16 = vmul.f32 %v440_v13, %v440_v13 }
 0x6f6   :  { %v451_v17 = vsub.f32 %v449_v15, %v450_v16 }
 0x6f8   :  { %v452_v18 = vmax.f32 %v451_v17, 0.0 }
 0x6fa   :  { %v453_v19 = vadd.f32 1e-05, %v452_v18 }
 0x6fc   :  { %1462 = vrsqrt.f32 %v453_v19 }
 0x706   :  { %v1463_v20 = vpop.eup %1462 }
 0x707   :  { %v455_v21 = vmul.f32 %v1463_v20, %v1727_v36 }
 0x709   :  { %v456_v22 = vmul.f32 %v455_v21, %v440_v13  ;;  %v462_v23 = vrot.slane %v455_v21, %v1729_v37 }
 0x70b   :  { %v457_v24 = vsub.f32 %v1735_v40, %v456_v22  ;;  %v464_v25 = vmul.f32 %v462_v23, %v432_v57 }
 0x70d   :  { %v469_v26 = vrot.slane %v457_v24, %v1729_v37 }
 0x70f   :  { %v471_v27 = vadd.f32 %v469_v26, %v464_v25 }
 0x711   :  { %1464 = vtanh.f32 %v471_v27 }
 0x71b   :  { %v1465_v28 = vpop.eup %1464 }
 0x71c   :  { %v473_v29 = vmul.f32 %v1465_v28, %v1740_v49 }
 0x71e   :  { %v474_v30 = vadd.f32 %v473_v29, %v1742_v51 }
 0x720   :  { %477 = vrot.lane.b32.xlu1 %v474_v30, %s1617_s7  ;;  %v475_v33 = vmul.f32 %v474_v30, %v345_v48 }
 0x792   :  { %v478_v31 = vpop.permute.xlu1 %477 }
 0x793   :  { %v480_v32 = vmul.f32 %v478_v31, %v474_v30 }
 0x795   :  { %482 = vrot.lane.b32.xlu0 %v480_v32, %s1626_s2 }
 0x807   :  { %v483_v34 = vpop.permute.xlu0 %482 }
 0x808   :  { %v485_v35 = vadd.f32 %v483_v34, %v475_v33 }
 0x80a   :  { %1466 = vtanh.f32 %v485_v35 }
 0x814   :  { %v1467_v38 = vpop.eup %1466 }
 0x815   :  { %488 = vrot.lane.b32.xlu1 %v1467_v38, %s1617_s7 }
 0x887   :  { %v489_v39 = vpop.permute.xlu1 %488 }
 0x888   :  { %v491_v41 = vmul.f32 %v489_v39, %v474_v30  ;;  %v639_v30 = vld [vmem:[#allocation4 + $0x10] sm:$0xf] }
 0x88a   :  { %493 = vrot.lane.b32.xlu0 %v491_v41, %s1626_s2 }
 0x8fc   :  { %v494_v42 = vpop.permute.xlu0 %493 }
 0x8fd   :  { %497 = vst.msk [vmem:[#allocation9 + $0x8] sm:$0xf] %vm54_vm0, %v494_v42  ;;  %1341 = vmatmul.mubr.msk.f32.vlgmr.msra.gmra.mrb[2].mxu1 %vm73_vm2, %v494_v42 }
 0x8fe   :  { %1419 = vmatpush3.bf16.msra.mxu1 %v1703_v5  ;;  %1362 = vmatprep.mubr.msk.f32.mxu1 %vm1623_vm1, %v1624_v1 }
 0x8ff   :  { %1420 = vmatprep.subr.bf16.mxu1 %v1622_v0 }
 0x902   :  { %1422 = vmatpush3.bf16.msra.mxu1 %v1706_v7 }
 0x903   :  { %1429 = vmatprep.subr.bf16.mxu1 %v1622_v0 }
 0x9d0   :  { %v568_v44 = vpop.f32.mrb[2].mxu1 }
 0x9d1   :  { %v572_v45 = vadd.f32 %v568_v44, %v499_v43  ;;  %v1342_v46 = vpop.f32.mrb[3].mxu1 }
 0x9d3   :  { %v573_v47 = vsel %vm148_vm3, %v572_v45, 0.0  ;;  %v581_v48 = vmul.f32 %v572_v45, %v572_v45 }
 0x9d4   :  { %v574_v50 = vrot.slane %v573_v47, 4 }
 0x9d5   :  { %v582_v52 = vsel %vm148_vm3, %v581_v48, 0.0 }
 0x9d6   :  { %v575_v53 = vadd.f32 %v574_v50, %v573_v47  ;;  %v583_v54 = vrot.slane %v582_v52, 4 }
 0x9d8   :  { %v576_v55 = vrot.slane %v575_v53, 2  ;;  %v584_v56 = vadd.f32 %v583_v54, %v582_v52 }
 0x9da   :  { %v577_v57 = vadd.f32 %v576_v55, %v575_v53  ;;  %v585_v58 = vrot.slane %v584_v56, 2 }
 0x9dc   :  { %v578_v59 = vrot.slane %v577_v57, 1  ;;  %v586_v60 = vadd.f32 %v585_v58, %v584_v56 }
 0x9de   :  { %v579_v61 = vadd.f32 %v578_v59, %v577_v57  ;;  %v587_v62 = vrot.slane %v586_v60, 1 }
 0x9e0   :  { %v580_v63 = vmul.f32 0.25, %v579_v61  ;;  %v588_v2 = vadd.f32 %v587_v62, %v586_v60 }
 0x9e2   :  { %v589_v3 = vmul.f32 0.25, %v588_v2  ;;  %v590_v4 = vmul.f32 %v580_v63, %v580_v63 }
 0x9e4   :  { %v591_v6 = vsub.f32 %v589_v3, %v590_v4 }
 0x9e6   :  { %v592_v8 = vmax.f32 %v591_v6, 0.0 }
 0x9e8   :  { %v593_v9 = vadd.f32 1e-05, %v592_v8 }
 0x9ea   :  { %1468 = vrsqrt.f32 %v593_v9 }
 0x9f4   :  { %v1469_v10 = vpop.eup %1468 }
 0x9f5   :  { %v595_v11 = vmul.f32 %v1469_v10, %v1727_v36 }
 0x9f7   :  { %v596_v12 = vmul.f32 %v595_v11, %v580_v63  ;;  %v602_v13 = vrot.slane %v595_v11, %v1729_v37 }
 0x9f9   :  { %v597_v14 = vsub.f32 %v1735_v40, %v596_v12  ;;  %v604_v15 = vmul.f32 %v602_v13, %v572_v45 }
 0x9fb   :  { %v609_v16 = vrot.slane %v597_v14, %v1729_v37 }
 0x9fd   :  { %v611_v17 = vadd.f32 %v609_v16, %v604_v15 }
 0x9ff   :  { %1470 = vtanh.f32 %v611_v17 }
 0xa09   :  { %v1471_v18 = vpop.eup %1470 }
 0xa0a   :  { %v613_v19 = vmul.f32 %v1471_v18, %v1740_v49 }
 0xa0c   :  { %v614_v20 = vadd.f32 %v613_v19, %v1742_v51 }
 0xa0e   :  { %617 = vrot.lane.b32.xlu1 %v614_v20, %s1617_s7  ;;  %v615_v23 = vmul.f32 %v614_v20, %v485_v35 }
 0xa80   :  { %v618_v21 = vpop.permute.xlu1 %617 }
 0xa81   :  { %v620_v22 = vmul.f32 %v618_v21, %v614_v20 }
 0xa83   :  { %622 = vrot.lane.b32.xlu0 %v620_v22, %s1626_s2 }
 0xaf5   :  { %v623_v24 = vpop.permute.xlu0 %622 }
 0xaf6   :  { %v625_v25 = vadd.f32 %v623_v24, %v615_v23 }
 0xaf8   :  { %1472 = vtanh.f32 %v625_v25 }
 0xb02   :  { %v1473_v26 = vpop.eup %1472 }
 0xb03   :  { %628 = vrot.lane.b32.xlu1 %v1473_v26, %s1617_s7 }
 0xb75   :  { %v629_v27 = vpop.permute.xlu1 %628 }
 0xb76   :  { %v631_v28 = vmul.f32 %v629_v27, %v614_v20  ;;  %v779_v20 = vld [vmem:[#allocation4 + $0x14] sm:$0xf] }
 0xb78   :  { %633 = vrot.lane.b32.xlu0 %v631_v28, %s1626_s2 }
 0xbea   :  { %v634_v29 = vpop.permute.xlu0 %633 }
 0xbeb   :  { %637 = vst.msk [vmem:[#allocation9 + $0xc] sm:$0xf] %vm54_vm0, %v634_v29  ;;  %1352 = vmatmul.mubr.msk.f32.vlgmr.msra.gmra.mrb[4].mxu0 %vm73_vm2, %v634_v29 }
 0xbec   :  { %1425 = vmatpush3.bf16.msra.mxu0 %v1703_v5  ;;  %1373 = vmatprep.mubr.msk.f32.mxu0 %vm1623_vm1, %v1624_v1 }
 0xbed   :  { %1426 = vmatprep.subr.bf16.mxu0 %v1622_v0 }
 0xbf0   :  { %1428 = vmatpush3.bf16.msra.mxu0 %v1706_v7 }
 0xcbe   :  { %v708_v31 = vpop.f32.mrb[4].mxu0 }
 0xcbf   :  { %v712_v32 = vadd.f32 %v708_v31, %v639_v30  ;;  %v1353_v33 = vpop.f32.mrb[5].mxu0 }
 0xcc1   :  { %v713_v34 = vsel %vm148_vm3, %v712_v32, 0.0  ;;  %v721_v35 = vmul.f32 %v712_v32, %v712_v32 }
 0xcc2   :  { %v714_v38 = vrot.slane %v713_v34, 4 }
 0xcc3   :  { %v722_v39 = vsel %vm148_vm3, %v721_v35, 0.0 }
 0xcc4   :  { %v715_v41 = vadd.f32 %v714_v38, %v713_v34  ;;  %v723_v42 = vrot.slane %v722_v39, 4 }
 0xcc6   :  { %v716_v43 = vrot.slane %v715_v41, 2  ;;  %v724_v44 = vadd.f32 %v723_v42, %v722_v39 }
 0xcc8   :  { %v717_v45 = vadd.f32 %v716_v43, %v715_v41  ;;  %v725_v46 = vrot.slane %v724_v44, 2 }
 0xcca   :  { %v718_v47 = vrot.slane %v717_v45, 1  ;;  %v726_v48 = vadd.f32 %v725_v46, %v724_v44 }
 0xccc   :  { %v719_v50 = vadd.f32 %v718_v47, %v717_v45  ;;  %v727_v52 = vrot.slane %v726_v48, 1 }
 0xcce   :  { %v720_v53 = vmul.f32 0.25, %v719_v50  ;;  %v728_v54 = vadd.f32 %v727_v52, %v726_v48 }
 0xcd0   :  { %v729_v55 = vmul.f32 0.25, %v728_v54  ;;  %v730_v56 = vmul.f32 %v720_v53, %v720_v53 }
 0xcd2   :  { %v731_v57 = vsub.f32 %v729_v55, %v730_v56 }
 0xcd4   :  { %v732_v58 = vmax.f32 %v731_v57, 0.0 }
 0xcd6   :  { %v733_v59 = vadd.f32 1e-05, %v732_v58 }
 0xcd8   :  { %1474 = vrsqrt.f32 %v733_v59 }
 0xce2   :  { %v1475_v60 = vpop.eup %1474 }
 0xce3   :  { %v735_v61 = vmul.f32 %v1475_v60, %v1727_v36 }
 0xce5   :  { %v736_v62 = vmul.f32 %v735_v61, %v720_v53  ;;  %v742_v63 = vrot.slane %v735_v61, %v1729_v37 }
 0xce7   :  { %v737_v2 = vsub.f32 %v1735_v40, %v736_v62  ;;  %v744_v3 = vmul.f32 %v742_v63, %v712_v32 }
 0xce9   :  { %v749_v4 = vrot.slane %v737_v2, %v1729_v37 }
 0xceb   :  { %v751_v6 = vadd.f32 %v749_v4, %v744_v3  ;;  %v919_v4 = vld [vmem:[#allocation4 + $0x18] sm:$0xf] }
 0xced   :  { %1476 = vtanh.f32 %v751_v6 }
 0xcf7   :  { %v1477_v8 = vpop.eup %1476 }
 0xcf8   :  { %v753_v9 = vmul.f32 %v1477_v8, %v1740_v49 }
 0xcfa   :  { %v754_v10 = vadd.f32 %v753_v9, %v1742_v51 }
 0xcfc   :  { %757 = vrot.lane.b32.xlu1 %v754_v10, %s1617_s7  ;;  %v755_v13 = vmul.f32 %v754_v10, %v625_v25 }
 0xd6e   :  { %v758_v11 = vpop.permute.xlu1 %757 }
 0xd6f   :  { %v760_v12 = vmul.f32 %v758_v11, %v754_v10 }
 0xd71   :  { %762 = vrot.lane.b32.xlu0 %v760_v12, %s1626_s2 }
 0xde3   :  { %v763_v14 = vpop.permute.xlu0 %762 }
 0xde4   :  { %v765_v15 = vadd.f32 %v763_v14, %v755_v13 }
 0xde6   :  { %1478 = vtanh.f32 %v765_v15 }
 0xdf0   :  { %v1479_v16 = vpop.eup %1478 }
 0xdf1   :  { %768 = vrot.lane.b32.xlu1 %v1479_v16, %s1617_s7 }
 0xe63   :  { %v769_v17 = vpop.permute.xlu1 %768 }
 0xe64   :  { %v771_v18 = vmul.f32 %v769_v17, %v754_v10 }
 0xe66   :  { %773 = vrot.lane.b32.xlu0 %v771_v18, %s1626_s2 }
 0xed8   :  { %v774_v19 = vpop.permute.xlu0 %773 }
 0xed9   :  { %777 = vst.msk [vmem:[#allocation9 + $0x10] sm:$0xf] %vm54_vm0, %v774_v19  ;;  %1363 = vmatmul.mubr.msk.f32.vlgmr.msra.gmra.mrb[4].mxu1 %vm73_vm2, %v774_v19 }
 0xeda   :  { %1431 = vmatpush3.bf16.msra.mxu1 %v1703_v5  ;;  %1384 = vmatprep.mubr.msk.f32.mxu1 %vm1623_vm1, %v1624_v1 }
 0xedb   :  { %1432 = vmatprep.subr.bf16.mxu1 %v1622_v0 }
 0xede   :  { %1434 = vmatpush3.bf16.msra.mxu1 %v1706_v7 }
 0xfac   :  { %v848_v21 = vpop.f32.mrb[4].mxu1 }
 0xfad   :  { %v852_v22 = vadd.f32 %v848_v21, %v779_v20  ;;  %v1364_v23 = vpop.f32.mrb[5].mxu1 }
 0xfaf   :  { %v853_v24 = vsel %vm148_vm3, %v852_v22, 0.0  ;;  %v861_v25 = vmul.f32 %v852_v22, %v852_v22 }
 0xfb0   :  { %v854_v26 = vrot.slane %v853_v24, 4 }
 0xfb1   :  { %v862_v27 = vsel %vm148_vm3, %v861_v25, 0.0 }
 0xfb2   :  { %v855_v28 = vadd.f32 %v854_v26, %v853_v24  ;;  %v863_v29 = vrot.slane %v862_v27, 4 }
 0xfb4   :  { %v856_v5 = vrot.slane %v855_v28, 2  ;;  %v864_v30 = vadd.f32 %v863_v29, %v862_v27 }
 0xfb6   :  { %v857_v31 = vadd.f32 %v856_v5, %v855_v28  ;;  %v865_v1 = vrot.slane %v864_v30, 2 }
 0xfb8   :  { %v858_v32 = vrot.slane %v857_v31, 1  ;;  %v866_v0 = vadd.f32 %v865_v1, %v864_v30 }
 0xfba   :  { %v859_v33 = vadd.f32 %v858_v32, %v857_v31  ;;  %v867_v7 = vrot.slane %v866_v0, 1 }
 0xfbc   :  { %v860_v34 = vmul.f32 0.25, %v859_v33  ;;  %v868_v35 = vadd.f32 %v867_v7, %v866_v0 }
 0xfbe   :  { %v869_v38 = vmul.f32 0.25, %v868_v35  ;;  %v870_v39 = vmul.f32 %v860_v34, %v860_v34 }
 0xfc0   :  { %v871_v41 = vsub.f32 %v869_v38, %v870_v39 }
 0xfc2   :  { %v872_v42 = vmax.f32 %v871_v41, 0.0 }
 0xfc4   :  { %v873_v43 = vadd.f32 1e-05, %v872_v42 }
 0xfc6   :  { %1480 = vrsqrt.f32 %v873_v43 }
 0xfd0   :  { %v1481_v44 = vpop.eup %1480 }
 0xfd1   :  { %v875_v45 = vmul.f32 %v1481_v44, %v1727_v36 }
 0xfd3   :  { %v876_v46 = vmul.f32 %v875_v45, %v860_v34  ;;  %v882_v47 = vrot.slane %v875_v45, %v1729_v37 }
 0xfd5   :  { %v877_v48 = vsub.f32 %v1735_v40, %v876_v46  ;;  %v884_v50 = vmul.f32 %v882_v47, %v852_v22 }
 0xfd7   :  { %v889_v52 = vrot.slane %v877_v48, %v1729_v37 }
 0xfd9   :  { %v891_v53 = vadd.f32 %v889_v52, %v884_v50  ;;  %v1059_v52 = vld [vmem:[#allocation4 + $0x1c] sm:$0xf] }
 0xfdb   :  { %1482 = vtanh.f32 %v891_v53 }
 0xfe5   :  { %v1483_v54 = vpop.eup %1482 }
 0xfe6   :  { %v893_v55 = vmul.f32 %v1483_v54, %v1740_v49 }
 0xfe8   :  { %v894_v56 = vadd.f32 %v893_v55, %v1742_v51 }
 0xfea   :  { %897 = vrot.lane.b32.xlu1 %v894_v56, %s1617_s7  ;;  %v895_v59 = vmul.f32 %v894_v56, %v765_v15 }
0x105c   :  { %v898_v57 = vpop.permute.xlu1 %897 }
0x105d   :  { %v900_v58 = vmul.f32 %v898_v57, %v894_v56 }
0x105f   :  { %902 = vrot.lane.b32.xlu0 %v900_v58, %s1626_s2 }
0x10d1   :  { %v903_v60 = vpop.permute.xlu0 %902 }
0x10d2   :  { %v905_v61 = vadd.f32 %v903_v60, %v895_v59 }
0x10d4   :  { %1484 = vtanh.f32 %v905_v61 }
0x10de   :  { %v1485_v62 = vpop.eup %1484 }
0x10df   :  { %908 = vrot.lane.b32.xlu1 %v1485_v62, %s1617_s7 }
0x1151   :  { %v909_v63 = vpop.permute.xlu1 %908 }
0x1152   :  { %v911_v2 = vmul.f32 %v909_v63, %v894_v56 }
0x1154   :  { %913 = vrot.lane.b32.xlu0 %v911_v2, %s1626_s2 }
0x11c6   :  { %v914_v3 = vpop.permute.xlu0 %913 }
0x11c7   :  { %917 = vst.msk [vmem:[#allocation9 + $0x14] sm:$0xf] %vm54_vm0, %v914_v3  ;;  %1374 = vmatmul.mubr.msk.f32.vlgmr.msra.gmra.mrb[6].mxu0 %vm73_vm2, %v914_v3 }
0x129a   :  { %v988_v6 = vpop.f32.mrb[6].mxu0 }
0x129b   :  { %v992_v8 = vadd.f32 %v988_v6, %v919_v4  ;;  %v1375_v9 = vpop.f32.mrb[7].mxu0 }
0x129d   :  { %v993_v10 = vsel %vm148_vm3, %v992_v8, 0.0  ;;  %v1001_v11 = vmul.f32 %v992_v8, %v992_v8 }
0x129e   :  { %v994_v12 = vrot.slane %v993_v10, 4 }
0x129f   :  { %v1002_v13 = vsel %vm148_vm3, %v1001_v11, 0.0 }
0x12a0   :  { %v995_v14 = vadd.f32 %v994_v12, %v993_v10  ;;  %v1003_v15 = vrot.slane %v1002_v13, 4 }
0x12a2   :  { %v996_v16 = vrot.slane %v995_v14, 2  ;;  %v1004_v17 = vadd.f32 %v1003_v15, %v1002_v13 }
0x12a4   :  { %v997_v18 = vadd.f32 %v996_v16, %v995_v14  ;;  %v1005_v19 = vrot.slane %v1004_v17, 2 }
0x12a6   :  { %v998_v20 = vrot.slane %v997_v18, 1  ;;  %v1006_v21 = vadd.f32 %v1005_v19, %v1004_v17 }
0x12a8   :  { %v999_v22 = vadd.f32 %v998_v20, %v997_v18  ;;  %v1007_v23 = vrot.slane %v1006_v21, 1 }
0x12aa   :  { %v1000_v24 = vmul.f32 0.25, %v999_v22  ;;  %v1008_v25 = vadd.f32 %v1007_v23, %v1006_v21 }
0x12ac   :  { %v1009_v26 = vmul.f32 0.25, %v1008_v25  ;;  %v1010_v27 = vmul.f32 %v1000_v24, %v1000_v24 }
0x12ae   :  { %v1011_v28 = vsub.f32 %v1009_v26, %v1010_v27 }
0x12b0   :  { %v1012_v29 = vmax.f32 %v1011_v28, 0.0 }
0x12b2   :  { %v1013_v5 = vadd.f32 1e-05, %v1012_v29 }
0x12b4   :  { %1486 = vrsqrt.f32 %v1013_v5 }
0x12be   :  { %v1487_v30 = vpop.eup %1486 }
0x12bf   :  { %v1015_v31 = vmul.f32 %v1487_v30, %v1727_v36 }
0x12c1   :  { %v1016_v1 = vmul.f32 %v1015_v31, %v1000_v24  ;;  %v1022_v32 = vrot.slane %v1015_v31, %v1729_v37 }
0x12c3   :  { %v1017_v0 = vsub.f32 %v1735_v40, %v1016_v1  ;;  %v1024_v33 = vmul.f32 %v1022_v32, %v992_v8 }
0x12c5   :  { %v1029_v7 = vrot.slane %v1017_v0, %v1729_v37 }
0x12c7   :  { %v1031_v34 = vadd.f32 %v1029_v7, %v1024_v33 }
0x12c9   :  { %1488 = vtanh.f32 %v1031_v34 }
0x12d3   :  { %v1489_v35 = vpop.eup %1488 }
0x12d4   :  { %v1033_v38 = vmul.f32 %v1489_v35, %v1740_v49 }
0x12d6   :  { %v1034_v39 = vadd.f32 %v1033_v38, %v1742_v51 }
0x12d8   :  { %1037 = vrot.lane.b32.xlu1 %v1034_v39, %s1617_s7  ;;  %v1035_v43 = vmul.f32 %v1034_v39, %v905_v61 }
0x134a   :  { %v1038_v41 = vpop.permute.xlu1 %1037 }
0x134b   :  { %v1040_v42 = vmul.f32 %v1038_v41, %v1034_v39 }
0x134d   :  { %1042 = vrot.lane.b32.xlu0 %v1040_v42, %s1626_s2 }
0x13bf   :  { %v1043_v44 = vpop.permute.xlu0 %1042 }
0x13c0   :  { %v1045_v45 = vadd.f32 %v1043_v44, %v1035_v43 }
0x13c2   :  { %1490 = vtanh.f32 %v1045_v45 }
0x13cc   :  { %v1491_v46 = vpop.eup %1490 }
0x13cd   :  { %1048 = vrot.lane.b32.xlu1 %v1491_v46, %s1617_s7 }
0x143f   :  { %v1049_v47 = vpop.permute.xlu1 %1048 }
0x1440   :  { %v1051_v48 = vmul.f32 %v1049_v47, %v1034_v39 }
0x1442   :  { %1053 = vrot.lane.b32.xlu0 %v1051_v48, %s1626_s2 }
0x14b4   :  { %v1054_v50 = vpop.permute.xlu0 %1053 }
0x14b5   :  { %1057 = vst.msk [vmem:[#allocation9 + $0x18] sm:$0xf] %vm54_vm0, %v1054_v50  ;;  %1385 = vmatmul.mubr.msk.f32.vlgmr.msra.gmra.mrb[6].mxu1 %vm73_vm2, %v1054_v50 }
0x1588   :  { %v1128_v53 = vpop.f32.mrb[6].mxu1 }
0x1589   :  { %v1132_v54 = vadd.f32 %v1128_v53, %v1059_v52  ;;  %v1386_v55 = vpop.f32.mrb[7].mxu1 }
0x158b   :  { %v1133_v56 = vsel %vm148_vm3, %v1132_v54, 0.0  ;;  %v1141_v57 = vmul.f32 %v1132_v54, %v1132_v54 }
0x158c   :  { %v1134_v58 = vrot.slane %v1133_v56, 4 }
0x158d   :  { %v1142_v59 = vsel %vm148_vm3, %v1141_v57, 0.0 }
0x158e   :  { %v1135_v60 = vadd.f32 %v1134_v58, %v1133_v56  ;;  %v1143_v61 = vrot.slane %v1142_v59, 4 }
0x1590   :  { %v1136_v62 = vrot.slane %v1135_v60, 2  ;;  %v1144_v63 = vadd.f32 %v1143_v61, %v1142_v59 }
0x1592   :  { %v1137_v2 = vadd.f32 %v1136_v62, %v1135_v60  ;;  %v1145_v3 = vrot.slane %v1144_v63, 2 }
0x1594   :  { %v1138_v4 = vrot.slane %v1137_v2, 1  ;;  %v1146_v6 = vadd.f32 %v1145_v3, %v1144_v63 }
0x1596   :  { %v1139_v8 = vadd.f32 %v1138_v4, %v1137_v2  ;;  %v1147_v9 = vrot.slane %v1146_v6, 1 }
0x1598   :  { %v1140_v10 = vmul.f32 0.25, %v1139_v8  ;;  %v1148_v11 = vadd.f32 %v1147_v9, %v1146_v6 }
0x159a   :  { %v1149_v12 = vmul.f32 0.25, %v1148_v11  ;;  %v1150_v13 = vmul.f32 %v1140_v10, %v1140_v10 }
0x159c   :  { %v1151_v14 = vsub.f32 %v1149_v12, %v1150_v13 }
0x159e   :  { %v1152_v15 = vmax.f32 %v1151_v14, 0.0 }
0x15a0   :  { %v1153_v16 = vadd.f32 1e-05, %v1152_v15 }
0x15a2   :  { %1492 = vrsqrt.f32 %v1153_v16 }
0x15ac   :  { %v1493_v17 = vpop.eup %1492 }
0x15ad   :  { %v1155_v18 = vmul.f32 %v1493_v17, %v1727_v36 }
0x15af   :  { %v1156_v19 = vmul.f32 %v1155_v18, %v1140_v10  ;;  %v1162_v20 = vrot.slane %v1155_v18, %v1729_v37 }
0x15b1   :  { %v1157_v21 = vsub.f32 %v1735_v40, %v1156_v19  ;;  %v1164_v22 = vmul.f32 %v1162_v20, %v1132_v54 }
0x15b3   :  { %v1169_v23 = vrot.slane %v1157_v21, %v1729_v37 }
0x15b5   :  { %v1171_v24 = vadd.f32 %v1169_v23, %v1164_v22 }
0x15b7   :  { %1494 = vtanh.f32 %v1171_v24 }
0x15c1   :  { %v1495_v25 = vpop.eup %1494 }
0x15c2   :  { %v1173_v26 = vmul.f32 %v1495_v25, %v1740_v49 }
0x15c4   :  { %v1174_v27 = vadd.f32 %v1173_v26, %v1742_v51 }
0x15c6   :  { %1177 = vrot.lane.b32.xlu1 %v1174_v27, %s1617_s7  ;;  %v1175_v36 = vmul.f32 %v1174_v27, %v1045_v45 }
0x1638   :  { %v1178_v28 = vpop.permute.xlu1 %1177 }
0x1639   :  { %v1180_v29 = vmul.f32 %v1178_v28, %v1174_v27 }
0x163b   :  { %1182 = vrot.lane.b32.xlu0 %v1180_v29, %s1626_s2 }
0x16ad   :  { %v1183_v5 = vpop.permute.xlu0 %1182 }
0x16ae   :  { %v1185_v30 = vadd.f32 %v1183_v5, %v1175_v36 }
0x16b0   :  { %1496 = vtanh.f32 %v1185_v30 }
0x16ba   :  { %v1497_v40 = vpop.eup %1496 }
0x16bb   :  { %1188 = vrot.lane.b32.xlu1 %v1497_v40, %s1617_s7 }
0x16bf   :  { %1200 = vrot.lane.b32.xlu1 %v1185_v30, %s1627_s3 }
0x172d   :  { %v1189_v37 = vpop.permute.xlu1 %1188 }
0x172e   :  { %v1191_v31 = vmul.f32 %v1189_v37, %v1174_v27 }
0x1730   :  { %1193 = vrot.lane.b32.xlu0 %v1191_v31, %s1626_s2 }
0x1731   :  { %v1201_v49 = vpop.permute.xlu1 %1200 }
0x1732   :  { %1203 = vst.msk [vmem:[#allocation3] sm:$0xf] %vm54_vm0, %v1201_v49  ;;  %1205 = vst.msk [vmem:[#allocation12] sm:$0xf] %vm54_vm0, %v1201_v49 }
0x17a2   :  { %v1194_v51 = vpop.permute.xlu0 %1193 }
0x17a3   :  { %1197 = vst.msk [vmem:[#allocation9 + $0x1c] sm:$0xf] %vm54_vm0, %v1194_v51  ;;  %1198 = vst.msk [vmem:[#allocation2] sm:$0xf] %vm54_vm0, %v1194_v51 }
0x17a4   :  { %1204 = vst.msk [vmem:[#allocation10] sm:$0xf] %vm54_vm0, %v1194_v51 }
0x17a5   :  { %1553 = shalt.err (!%p1550_p6)
}
0x17a6   :  { %s1554_s14 = scalar_lea.hbm %s1940_s5, 64 }
0x17a7   :  { %p1555_p7 = scmp.ne.s32.totalorder %s1940_s5, %s1554_s14  ;;  %p1558_p8 = scmp.lt.u32.totalorder %s1554_s14, %s1940_s5 }
0x17a9   :  { %p1560_p9 = pnand %p1558_p8, %p1555_p7 }
0x17ab   :  { %1563 = shalt.err (!%p1560_p9)
}
0x17ac   :  { %1227 = dma.vmem_to_hbm [thread:$0]  %s1225_s28, 64, %s1940_s5, [#allocation11]  }
0x17ad   :  { %s1564_s0 = scalar_lea.vmem %s1879_s30, 512  ;;  %p1569_p11 = scmp.lt.s32.totalorder %s1879_s30, %s1879_s30 }
0x17ae   :  { %p1565_p10 = scmp.ne.s32.totalorder %s1879_s30, %s1564_s0  ;;  %p1570_p12 = scmp.lt.s32.totalorder %s1564_s0, %s1564_s0 }
0x17b0   :  { %p1571_p13 = por %p1570_p12, %p1569_p11 }
0x17b2   :  { %p1572_p0 = pnand %p1571_p13, %p1565_p10 }
0x17b4   :  { %1575 = shalt.err (!%p1572_p0)
}
0x17b5   :  { %s1576_s23 = scalar_lea.hbm %s1939_s4, 512 }
0x17b6   :  { %p1577_p1 = scmp.ne.s32.totalorder %s1939_s4, %s1576_s23  ;;  %p1580_p2 = scmp.lt.u32.totalorder %s1576_s23, %s1939_s4 }
0x17b8   :  { %p1582_p3 = pnand %p1580_p2, %p1577_p1 }
0x17ba   :  { %1585 = shalt.err (!%p1582_p3)
}
0x17bb   :  { %1217 = dma.vmem_to_hbm [thread:$0]  %s1879_s30, 512, %s1939_s4, [#allocation6], %s1617_s7, %s1617_s7, %s1618_s8  }
0x17bc   :  { %s1586_s3 = scalar_lea.vmem %s1884_s10, 64  ;;  %p1591_p5 = scmp.lt.s32.totalorder %s1884_s10, %s1884_s10 }
0x17bd   :  { %p1587_p4 = scmp.ne.s32.totalorder %s1884_s10, %s1586_s3  ;;  %p1592_p6 = scmp.lt.s32.totalorder %s1586_s3, %s1586_s3 }
0x17bf   :  { %p1593_p7 = por %p1592_p6, %p1591_p5 }
0x17c1   :  { %p1594_p8 = pnand %p1593_p7, %p1587_p4 }
0x17c3   :  { %1597 = shalt.err (!%p1594_p8)
}
0x17c4   :  { %s1598_s29 = scalar_lea.hbm %s1941_s6, 64 }
0x17c5   :  { %p1599_p9 = scmp.ne.s32.totalorder %s1941_s6, %s1598_s29  ;;  %p1602_p10 = scmp.lt.u32.totalorder %s1598_s29, %s1941_s6 }
0x17c7   :  { %p1604_p11 = pnand %p1602_p10, %p1599_p9 }
0x17c9   :  { %1607 = shalt.err (!%p1604_p11)
}
0x17ca   :  { %1237 = dma.vmem_to_hbm [thread:$0]  %s1884_s10, 64, %s1941_s6, [#allocation11]  }
0x17cb   :  { %1612 = dma.done.wait [#allocation6], 512  }
0x17cc   :  { %1613 = vsyncadd [#allocation6], 4294966784 }
0x17cd   :  { %1614 = dma.done.wait [#allocation11], 128  }
0x17ce   :  { %1615 = vsyncadd [#allocation11], 4294967168 }
0x17cf   :  { %1247 = vsyncpa [#allocation5], 1 }
0x17d0   :  { %1248 = vsyncpa [#allocation8], 1 }
0x17d1   :  { %1249 = vsyncpa [#allocation6], 1 }
0x17d2   :  { %1250 = vsyncpa [#allocation11], 1 }

</bundles_post_ra>
